<compile_context>
chip_gen: v6e
topology: v6e:2x2x1
jax: 0.10.0
libtpu: 0.0.40
codegen_flags: <defaults>
</compile_context>

<pallas_src>
import functools

import jax
import jax.numpy as jnp
from jax.experimental import pallas as pl
from jax.experimental.pallas import tpu as pltpu

_LANE = 128
# v7x-safe default (64 MiB VMEM).  v5e/v6e (128 MiB VMEM) can use 65536.
_DEFAULT_MAX_BLOCK_B = 32768


def _ffn_kernel(xT_ref, w0_ref, b0_ref, w1_ref, b1_ref, w2t_ref, b2_ref, o_ref):
    """One batch tile of the fused 3-layer MLP; batch on the lane axis."""
    x = xT_ref[...]                       # [d_in, block_b]  (f32 or bf16)

    # Layer 1: h = tanh(W1 @ x + b1).  MXU with f32 accumulation, tanh in f32
    # (v5e has no bf16 VPU/EUP; EUP cost is identical on v6e/v7x either way
    #  until it becomes the binding unit).
    h = jnp.dot(w0_ref[...], x, preferred_element_type=jnp.float32)
    h = jnp.tanh(h + b0_ref[...])         # [d_h1, block_b], f32

    # Layer 2: h = tanh(W2 @ h + b2).  Pure f32 on the MXU -- this kernel is
    # nowhere near MXU-bound, so bf16 MXU inputs would buy nothing here.
    h = jnp.dot(w1_ref[...], h, preferred_element_type=jnp.float32)
    h = jnp.tanh(h + b1_ref[...])         # [d_h2, block_b], f32

    # Output layer: o = W3 @ h + b3 (no activation on the last layer).
    w2t = w2t_ref[...]                    # [d_h2, d_out]
    if w2t.shape[-1] == 1:
        # d_out == 1: VPU broadcast-multiply + sublane (XLU) reduce.
        # (If profiling ever shows VALU/XLU as the binding slots, swap this for
        #  a 1-row MXU dot_general -- the MXU has huge slack here.)
        o = jnp.sum(w2t * h, axis=0, keepdims=True)       # [1, block_b]
    else:
        o = jax.lax.dot_general(w2t, h, (((0,), (0,)), ((), ())),
                                preferred_element_type=jnp.float32)
    o_ref[...] = (o + b2_ref[...]).astype(o_ref.dtype)


def _choose_block_b(batch, block_b, max_block_b):
    """Fewest grid steps that fit the VMEM cap; lane-legal (multiple of 128)."""
    if block_b is None:
        block_b = max_block_b
    block_b = min(block_b, batch)
    if block_b < batch:
        block_b = max(_LANE, (block_b // _LANE) * _LANE)
    return block_b


@functools.partial(jax.jit, static_argnames=("block_b", "max_block_b"))
def feedforward_pallas_feature_major(x_fm, params, block_b=None,
                                     max_block_b=_DEFAULT_MAX_BLOCK_B):
    """Fused MLP forward on feature-major activations (the fast path).

    x_fm:   [input_dim, B]  -- batch on the minor axis; no transposes anywhere,
            every HBM stream is read/written exactly once.  Supply bf16 here to
            halve the dominant x stream (accumulation stays f32).
    params: (w0, b0, w1, b1, w2, b2) in PyTorch nn.Linear layout:
            wi: [out_i, in_i], bi: [out_i, 1].
    returns [output_dim, B] float32.
    """
    w0, b0, w1, b1, w2, b2 = params
    d_in, batch = x_fm.shape
    d_h1 = w0.shape[0]
    d_h2 = w1.shape[0]
    d_out = w2.shape[0]

    # bf16 producer path: cast only the tiny first-layer weight once (outside
    # the kernel) so the x-consuming matmul runs natively in bf16 on the MXU.
    # Never cast the big activation stream per grid step, and never on v5e
    # (a v5e caller simply keeps feeding f32).
    if x_fm.dtype == jnp.bfloat16:
        w0 = w0.astype(jnp.bfloat16)

    w2_t = w2.T                           # [d_h2, d_out] (tiny; enables VPU reduce)

    block_b = _choose_block_b(batch, block_b, max_block_b)
    grid = (pl.cdiv(batch, block_b),)
    # NOTE: if batch % block_b != 0 the trailing tile computes on padded
    # (uninitialized) lanes.  Every op here is lane-local in the batch axis
    # (all contractions are over feature/sublane dims), so garbage stays
    # confined to padded lanes and the writeback is clipped.

    out_fm = pl.pallas_call(
        _ffn_kernel,
        out_shape=jax.ShapeDtypeStruct((d_out, batch), jnp.float32),
        grid_spec=pltpu.PrefetchScalarGridSpec(
            num_scalar_prefetch=0,
            grid=grid,
            in_specs=[
                # batch-tiled activations (batch on lanes)
                pl.BlockSpec((d_in, block_b), lambda i: (0, i)),
                # weights / biases: full blocks, identical for every grid step
                pl.BlockSpec((d_h1, d_in), lambda i: (0, 0)),
                pl.BlockSpec((d_h1, 1), lambda i: (0, 0)),
                pl.BlockSpec((d_h2, d_h1), lambda i: (0, 0)),
                pl.BlockSpec((d_h2, 1), lambda i: (0, 0)),
                pl.BlockSpec((d_h2, d_out), lambda i: (0, 0)),
                pl.BlockSpec((d_out, 1), lambda i: (0, 0)),
            ],
            out_specs=pl.BlockSpec((d_out, block_b), lambda i: (0, i)),
        ),
        compiler_params=pltpu.CompilerParams(
            # Multi-step grids shard the batch axis across v7x's 2 TensorCores;
            # on v5e/v6e (1 TC) the default single step avoids per-step overhead.
            dimension_semantics=("parallel",),
            # Peak footprint at block_b=32768 is ~14-16 MiB; 48 MiB leaves
            # headroom on v7x's 64 MiB VMEM and is trivially safe on v5e/v6e.
            vmem_limit_bytes=48 * 1024 * 1024,
        ),
    )(x_fm, w0, b0, w1, b1, w2_t, b2)
    return out_fm


@functools.partial(jax.jit, static_argnames=("block_b", "max_block_b"))
def feedforward_pallas(x, params, block_b=None, max_block_b=_DEFAULT_MAX_BLOCK_B):
    """PyTorch-layout entry point: x [B, input_dim] -> [B, output_dim].

    Does one x.T (an extra HBM pass over x) to present the kernel a lane-dense,
    densely-tiled activation slab; callers that can produce [input_dim, B]
    directly should call `feedforward_pallas_feature_major` and skip it.
    The final out.T is free for output_dim == 1.
    """
    out_fm = feedforward_pallas_feature_major(
        x.T, params, block_b=block_b, max_block_b=max_block_b)
    return out_fm.T


def feedforward_ref(x, params):
    """Pure-JAX reference matching the PyTorch forward semantics."""
    w0, b0, w1, b1, w2, b2 = params
    h = jnp.tanh(x @ w0.T + b0[:, 0])
    h = jnp.tanh(h @ w1.T + b1[:, 0])
    return h @ w2.T + b2[:, 0]


def init_params(key, arch):
    """Deterministic init mimicking nn.Linear defaults (uniform +-1/sqrt(fan_in)).

    Weights stored in PyTorch layout [out, in]; biases as [out, 1].
    """
    params = []
    for i in range(len(arch) - 1):
        fan_in, fan_out = arch[i], arch[i + 1]
        key, kw, kb = jax.random.split(key, 3)
        bound = 1.0 / jnp.sqrt(fan_in)
        w = jax.random.uniform(kw, (fan_out, fan_in), jnp.float32, -bound, bound)
        b = jax.random.uniform(kb, (fan_out, 1), jnp.float32, -bound, bound)
        params.extend([w, b])
    return tuple(params)


if __name__ == "__main__":
    # arch = [input_dim] + (depth-1)*[width] + [output_dim] = [4, 32, 32, 1]
    arch = [4, 32, 32, 1]
    batch = 2048

    key = jax.random.PRNGKey(0)
    key, kx = jax.random.split(key)
    x = jax.random.normal(kx, (batch, arch[0]), jnp.float32)
    params = init_params(key, arch)

    ref = feedforward_ref(x, params)

    # 1) Default path: fewest grid steps that fit VMEM (single step here), f32.
    out = jax.block_until_ready(feedforward_pallas(x, params))
    assert out.shape == (batch, arch[-1]), out.shape
    assert jnp.allclose(out, ref, atol=1e-5, rtol=1e-5), (
        "f32 mismatch vs reference: max abs err = "
        f"{float(jnp.max(jnp.abs(out - ref)))}"
    )

    # 2) Explicitly tiled path (4 grid steps) -- exercises the batch grid that
    #    shards across v7x's two TensorCores for large B.
    out_tiled = jax.block_until_ready(feedforward_pallas(x, params, block_b=512))
    assert jnp.allclose(out_tiled, ref, atol=1e-5, rtol=1e-5), (
        "tiled mismatch vs reference: max abs err = "
        f"{float(jnp.max(jnp.abs(out_tiled - ref)))}"
    )

    # 3) Feature-major fast path (producer supplies [d_in, B]; zero transposes).
    out_fm = jax.block_until_ready(
        feedforward_pallas_feature_major(x.T, params))
    assert jnp.allclose(out_fm.T, ref, atol=1e-5, rtol=1e-5), (
        "feature-major mismatch vs reference: max abs err = "
        f"{float(jnp.max(jnp.abs(out_fm.T - ref)))}"
    )

    # 4) bf16 producer path (halves the dominant x HBM stream); f32 accumulate,
    #    f32 tanh, f32 output.  Error comes from the input cast only.
    x_bf16 = x.astype(jnp.bfloat16)
    out_bf16 = jax.block_until_ready(feedforward_pallas(x_bf16, params))
    assert jnp.allclose(out_bf16, ref, atol=5e-2, rtol=5e-2), (
        "bf16 mismatch vs reference: max abs err = "
        f"{float(jnp.max(jnp.abs(out_bf16 - ref)))}"
    )

    print("KERNEL_OK")
</pallas_src>

<mosaic_0001>
module attributes {stable_mosaic.version = 11 : i64} {
  func.func @_ffn_kernel(%arg0: i32, %arg1: memref<4x2048xf32, #tpu.memory_space<vmem>>, %arg2: memref<32x4xf32, #tpu.memory_space<vmem>>, %arg3: memref<32x1xf32, #tpu.memory_space<vmem>>, %arg4: memref<32x32xf32, #tpu.memory_space<vmem>>, %arg5: memref<32x1xf32, #tpu.memory_space<vmem>>, %arg6: memref<32x1xf32, #tpu.memory_space<vmem>>, %arg7: memref<1x1xf32, #tpu.memory_space<vmem>>, %arg8: memref<1x2048xf32, #tpu.memory_space<vmem>>) attributes {dimension_semantics = [#tpu.dimension_semantics<parallel>], iteration_bounds = array<i64: 1>, scalar_prefetch = 0 : i64, scratch_operands = 0 : i64, tpu.core_type = #tpu.core_type<tc>, window_params = [{transform_indices = @transform_0, window_bounds = array<i64: 4, 2048>}, {pipeline_mode = #tpu.pipeline_mode<synchronous>, transform_indices = @transform_1, window_bounds = array<i64: 32, 4>}, {pipeline_mode = #tpu.pipeline_mode<synchronous>, transform_indices = @transform_2, window_bounds = array<i64: 32, 1>}, {pipeline_mode = #tpu.pipeline_mode<synchronous>, transform_indices = @transform_3, window_bounds = array<i64: 32, 32>}, {pipeline_mode = #tpu.pipeline_mode<synchronous>, transform_indices = @transform_4, window_bounds = array<i64: 32, 1>}, {pipeline_mode = #tpu.pipeline_mode<synchronous>, transform_indices = @transform_5, window_bounds = array<i64: 32, 1>}, {pipeline_mode = #tpu.pipeline_mode<synchronous>, transform_indices = @transform_6, window_bounds = array<i64: 1, 1>}, {transform_indices = @transform_7, window_bounds = array<i64: 1, 2048>}]} {
    %c0 = arith.constant 0 : index
    %c0_0 = arith.constant 0 : index
    %0 = vector.load %arg1[%c0, %c0_0] : memref<4x2048xf32, #tpu.memory_space<vmem>>, vector<4x2048xf32>
    %c0_1 = arith.constant 0 : index
    %c0_2 = arith.constant 0 : index
    %1 = vector.load %arg2[%c0_1, %c0_2] : memref<32x4xf32, #tpu.memory_space<vmem>>, vector<32x4xf32>
    %cst = arith.constant dense<0.000000e+00> : vector<32x2048xf32>
    %2 = tpu.matmul %1, %0, %cst {dimension_numbers = #tpu.dot_dimension_numbers<[1], [0], [0], [1], [0, 0, 1, 1], [], []>} : vector<32x4xf32>, vector<4x2048xf32>, vector<32x2048xf32> -> vector<32x2048xf32>
    %c0_3 = arith.constant 0 : index
    %c0_4 = arith.constant 0 : index
    %3 = vector.load %arg3[%c0_3, %c0_4] : memref<32x1xf32, #tpu.memory_space<vmem>>, vector<32x1xf32>
    %4 = vector.broadcast %3 : vector<32x1xf32> to vector<32x2048xf32>
    %5 = arith.addf %2, %4 : vector<32x2048xf32>
    %6 = math.tanh %5 : vector<32x2048xf32>
    %c0_5 = arith.constant 0 : index
    %c0_6 = arith.constant 0 : index
    %7 = vector.load %arg4[%c0_5, %c0_6] : memref<32x32xf32, #tpu.memory_space<vmem>>, vector<32x32xf32>
    %cst_7 = arith.constant dense<0.000000e+00> : vector<32x2048xf32>
    %8 = tpu.matmul %7, %6, %cst_7 {dimension_numbers = #tpu.dot_dimension_numbers<[1], [0], [0], [1], [0, 0, 1, 1], [], []>} : vector<32x32xf32>, vector<32x2048xf32>, vector<32x2048xf32> -> vector<32x2048xf32>
    %c0_8 = arith.constant 0 : index
    %c0_9 = arith.constant 0 : index
    %9 = vector.load %arg5[%c0_8, %c0_9] : memref<32x1xf32, #tpu.memory_space<vmem>>, vector<32x1xf32>
    %10 = vector.broadcast %9 : vector<32x1xf32> to vector<32x2048xf32>
    %11 = arith.addf %8, %10 : vector<32x2048xf32>
    %12 = math.tanh %11 : vector<32x2048xf32>
    %c0_10 = arith.constant 0 : index
    %c0_11 = arith.constant 0 : index
    %13 = vector.load %arg6[%c0_10, %c0_11] : memref<32x1xf32, #tpu.memory_space<vmem>>, vector<32x1xf32>
    %14 = vector.broadcast %13 : vector<32x1xf32> to vector<32x2048xf32>
    %15 = arith.mulf %14, %12 : vector<32x2048xf32>
    %cst_12 = arith.constant dense<0.000000e+00> : vector<2048xf32>
    %16 = vector.multi_reduction <add>, %15, %cst_12 [0] : vector<32x2048xf32> to vector<2048xf32>
    %17 = vector.shape_cast %16 : vector<2048xf32> to vector<1x2048xf32>
    %c0_13 = arith.constant 0 : index
    %c0_14 = arith.constant 0 : index
    %18 = vector.load %arg7[%c0_13, %c0_14] : memref<1x1xf32, #tpu.memory_space<vmem>>, vector<1x1xf32>
    %19 = vector.broadcast %18 : vector<1x1xf32> to vector<1x2048xf32>
    %20 = arith.addf %17, %19 : vector<1x2048xf32>
    %c0_15 = arith.constant 0 : index
    %c0_16 = arith.constant 0 : index
    %21 = vector.load %arg8[%c0_15, %c0_16] : memref<1x2048xf32, #tpu.memory_space<vmem>>, vector<1x2048xf32>
    tpu.vector_store %arg8[%c0_15, %c0_16], %20 {strides = array<i32>} : memref<1x2048xf32, #tpu.memory_space<vmem>>, vector<1x2048xf32>,
    return
  }
  func.func @transform_0(%arg0: i32) -> (i32, i32) {
    %c0_i32 = arith.constant 0 : i32
    %c0_i32_0 = arith.constant 0 : i32
    return %c0_i32, %arg0 : i32, i32
  }
  func.func @transform_1(%arg0: i32) -> (i32, i32) {
    %c0_i32 = arith.constant 0 : i32
    %c0_i32_0 = arith.constant 0 : i32
    %c0_i32_1 = arith.constant 0 : i32
    return %c0_i32, %c0_i32_0 : i32, i32
  }
  func.func @transform_2(%arg0: i32) -> (i32, i32) {
    %c0_i32 = arith.constant 0 : i32
    %c0_i32_0 = arith.constant 0 : i32
    %c0_i32_1 = arith.constant 0 : i32
    return %c0_i32, %c0_i32_0 : i32, i32
  }
  func.func @transform_3(%arg0: i32) -> (i32, i32) {
    %c0_i32 = arith.constant 0 : i32
    %c0_i32_0 = arith.constant 0 : i32
    %c0_i32_1 = arith.constant 0 : i32
    return %c0_i32, %c0_i32_0 : i32, i32
  }
  func.func @transform_4(%arg0: i32) -> (i32, i32) {
    %c0_i32 = arith.constant 0 : i32
    %c0_i32_0 = arith.constant 0 : i32
    %c0_i32_1 = arith.constant 0 : i32
    return %c0_i32, %c0_i32_0 : i32, i32
  }
  func.func @transform_5(%arg0: i32) -> (i32, i32) {
    %c0_i32 = arith.constant 0 : i32
    %c0_i32_0 = arith.constant 0 : i32
    %c0_i32_1 = arith.constant 0 : i32
    return %c0_i32, %c0_i32_0 : i32, i32
  }
  func.func @transform_6(%arg0: i32) -> (i32, i32) {
    %c0_i32 = arith.constant 0 : i32
    %c0_i32_0 = arith.constant 0 : i32
    %c0_i32_1 = arith.constant 0 : i32
    return %c0_i32, %c0_i32_0 : i32, i32
  }
  func.func @transform_7(%arg0: i32) -> (i32, i32) {
    %c0_i32 = arith.constant 0 : i32
    %c0_i32_0 = arith.constant 0 : i32
    return %c0_i32, %arg0 : i32, i32
  }
}

</mosaic_0001>

<bundles_post_ra>
// kernel: feedforward_pallas_feature_major.1
= control target key start
LH: loop header
LB: loop body
LE: loop exit
PB: predicated region body
PF: predicated region fallthrough
CT: control target
= control target key end

     0   :  { %s3230_s0 = inlined_call_operand.vmem [shape: f32[4,2048], index: 0, kind: input, shape index: {}]   ;;  %s3231_s1 = inlined_call_operand.vmem [shape: f32[32,4], index: 1, kind: input, shape index: {}]   ;;  %s3232_s2 = inlined_call_operand.vmem [shape: f32[32,1], index: 2, kind: input, shape index: {}]   ;;  %s3233_s3 = inlined_call_operand.vmem [shape: f32[32,32], index: 3, kind: input, shape index: {}]   ;;  %s3234_s4 = inlined_call_operand.vmem [shape: f32[32,1], index: 4, kind: input, shape index: {}]   ;;  %s3235_s5 = inlined_call_operand.vmem [shape: f32[32,1], index: 5, kind: input, shape index: {}]   ;;  %s3236_s6 = inlined_call_operand.<no memory space> [shape: f32[1,1], index: 6, kind: input, shape index: {}]   ;;  %s3237_s7 = inlined_call_operand.hbm [shape: f32[1,2048], index: 7, kind: output, shape index: {}]  }
   0x1   :  { %v12_v0 = vstv %s3236_s6 }
   0x2   :  { %13 = vst [vmem:[#allocation2] sm:$0x1] %v12_v0 }
   0x3   :  { %v29_v1 = vld [vmem:[%s3230_s0] sm:$0xff]  ;;  %vm94_vm0 = vcmask 1043456   ;;  %v30_v2 = vld [vmem:[%s3230_s0 + $0x8] sm:$0xff]  ;;  %v2482_v5 = vmov 0.0   ;;  %v31_v6 = vld [vmem:[%s3230_s0 + $0x10] sm:$0xff]  ;;  %vm81_vm1 = vcmask 31744  }
   0x4   :  { %v73_v3 = vcombine.high %v29_v1, %v29_v1  ;;  %v74_v4 = vcombine.high %v30_v2, %v30_v2  ;;  %191 = vmatprep.mubr.f32.mxu0 %v2482_v5  ;;  %280 = vmatprep.mubr.f32.mxu1 %v2482_v5  ;;  %v2543_v7 = vld [vmem:[%s3231_s1] sm:$0xff]  ;;  %v32_v8 = vld [vmem:[%s3230_s0 + $0x18] sm:$0xff]  ;;  %v2483_v9 = vmov 0   ;;  %v75_v10 = vcombine.high %v31_v6, %v31_v6  ;;  %v34_v13 = vld [vmem:[%s3230_s0 + $0x28] sm:$0xff] }
   0x5   :  { %2194 = vset.pattern.permute.xlu0 %v2483_v9  ;;  %2195 = vset.pattern.permute.xlu1 %v2483_v9  ;;  %v76_v11 = vcombine.high %v32_v8, %v32_v8  ;;  %v33_v12 = vld [vmem:[%s3230_s0 + $0x20] sm:$0xff]  ;;  %v2567_v14 = vld [vmem:[%s3231_s1 + $0x8] sm:$0xff]  ;;  %v78_v16 = vcombine.high %v34_v13, %v34_v13 }
   0x6   :  { %2110 = vmatprep.subr.msk.mxu0 %vm94_vm0, %v73_v3  ;;  %2116 = vmatprep.subr.msk.mxu1 %vm94_vm0, %v74_v4  ;;  %v77_v15 = vcombine.high %v33_v12, %v33_v12 }
   0x7   :  { %2111 = vmatpush1.msk.msra.mxu0 %vm94_vm0, %v29_v1  ;;  %2117 = vmatpush1.msk.msra.mxu1 %vm94_vm0, %v30_v2 }
   0x8   :  { %2112 = vmatmul.mubr.msk.f32.vlgmr.msra.gmra.mxu0 %vm81_vm1, %v2543_v7  ;;  %2118 = vmatmul.mubr.msk.f32.vlgmr.msra.gmra.mxu1 %vm81_vm1, %v2543_v7 }
   0x9   :  { %197 = vmatprep.mubr.f32.mxu0 %v2482_v5  ;;  %286 = vmatprep.mubr.f32.mxu1 %v2482_v5 }
   0xa   :  { %2122 = vmatprep.subr.msk.mxu0 %vm94_vm0, %v75_v10  ;;  %2128 = vmatprep.subr.msk.mxu1 %vm94_vm0, %v76_v11 }
   0xb   :  { %2123 = vmatpush1.msk.msra.mxu0 %vm94_vm0, %v31_v6  ;;  %2129 = vmatpush1.msk.msra.mxu1 %vm94_vm0, %v32_v8 }
   0xc   :  { %14 = vsyncpa [#allocation4], 0  ;;  %2113 = vmatmul.mubr.msk.f32.gmra.mxu0 %vm81_vm1, %v2567_v14  ;;  %2119 = vmatmul.mubr.msk.f32.gmra.mxu1 %vm81_vm1, %v2567_v14  ;;  %v44_v17 = vld [vmem:[%s3232_s2 + $0x18] sm:$0xff]  ;;  %v42_v18 = vld [vmem:[%s3232_s2 + $0x8] sm:$0xff]  ;;  %vm931_vm2 = vcmask 261120  }
   0xd   :  { %203 = vmatprep.mubr.f32.mxu0 %v2482_v5  ;;  %292 = vmatprep.mubr.f32.mxu1 %v2482_v5  ;;  %v2588_v19 = vld [vmem:[%s3231_s1 + $0x10] sm:$0xff]  ;;  %v41_v21 = vld [vmem:[%s3232_s2] sm:$0xff]  ;;  %v2607_v22 = vld [vmem:[%s3231_s1 + $0x18] sm:$0xff] }
   0xe   :  { %2134 = vmatprep.subr.msk.mxu0 %vm94_vm0, %v77_v15  ;;  %2140 = vmatprep.subr.msk.mxu1 %vm94_vm0, %v78_v16  ;;  %v43_v20 = vld [vmem:[%s3232_s2 + $0x10] sm:$0xff]  ;;  %v36_v24 = vld [vmem:[%s3230_s0 + $0x38] sm:$0xff]  ;;  %v907_v25 = vld [vmem:[%s3234_s4] sm:$0xff] }
   0xf   :  { %62 = vperm.xlu0 %2194, %v44_v17   ;;  %52 = vperm.xlu1 %2195, %v42_v18   ;;  %v35_v23 = vld [vmem:[%s3230_s0 + $0x30] sm:$0xff]  ;;  %v908_v26 = vld [vmem:[%s3234_s4 + $0x8] sm:$0xff]  ;;  %v80_v28 = vcombine.high %v36_v24, %v36_v24  ;;  %v910_v30 = vld [vmem:[%s3234_s4 + $0x18] sm:$0xff] }
  0x10   :  { %2114 = vmatmul.mubr.msk.f32.gmra.mxu0 %vm81_vm1, %v2588_v19  ;;  %2120 = vmatmul.mubr.msk.f32.gmra.mxu1 %vm81_vm1, %v2588_v19  ;;  %v79_v27 = vcombine.high %v35_v23, %v35_v23  ;;  %v909_v29 = vld [vmem:[%s3234_s4 + $0x10] sm:$0xff]  ;;  %v1720_v31 = vld [vmem:[%s3235_s5] sm:$0xff]  ;;  %v1721_v32 = vld [vmem:[%s3235_s5 + $0x8] sm:$0xff] }
  0x11   :  { %209 = vmatprep.mubr.f32.mxu0 %v2482_v5  ;;  %298 = vmatprep.mubr.f32.mxu1 %v2482_v5  ;;  %v1722_v33 = vld [vmem:[%s3235_s5 + $0x10] sm:$0xff]  ;;  %v1723_v34 = vld [vmem:[%s3235_s5 + $0x18] sm:$0xff]  ;;  %v1952_v35 = vld [vmem:[#allocation2] sm:$0x1] }
  0x13   :  { %57 = vperm.xlu0 %2194, %v43_v20   ;;  %47 = vperm.xlu1 %2195, %v41_v21  }
  0x14   :  { %2115 = vmatmul.mubr.msk.f32.gmra.mxu0 %vm81_vm1, %v2607_v22  ;;  %2121 = vmatmul.mubr.msk.f32.gmra.mxu1 %vm81_vm1, %v2607_v22 }
  0x15   :  { %369 = vmatprep.mubr.f32.mxu0 %v2482_v5  ;;  %458 = vmatprep.mubr.f32.mxu1 %v2482_v5 }
  0x17   :  { %913 = vperm.xlu0 %2194, %v907_v25   ;;  %918 = vperm.xlu1 %2195, %v908_v26  }
  0x18   :  { %2124 = vmatmul.mubr.msk.f32.vlgmr.msra.gmra.mxu0 %vm81_vm1, %v2543_v7  ;;  %2130 = vmatmul.mubr.msk.f32.vlgmr.msra.gmra.mxu1 %vm81_vm1, %v2543_v7 }
  0x19   :  { %375 = vmatprep.mubr.f32.mxu0 %v2482_v5  ;;  %464 = vmatprep.mubr.f32.mxu1 %v2482_v5 }
  0x1a   :  { %2135 = vmatpush1.msk.msra.mxu0 %vm94_vm0, %v33_v12  ;;  %2141 = vmatpush1.msk.msra.mxu1 %vm94_vm0, %v34_v13 }
  0x1b   :  { %2146 = vmatprep.subr.msk.mxu0 %vm94_vm0, %v79_v27  ;;  %2152 = vmatprep.subr.msk.mxu1 %vm94_vm0, %v80_v28 }
  0x1c   :  { %2125 = vmatmul.mubr.msk.f32.gmra.mxu0 %vm81_vm1, %v2567_v14  ;;  %2131 = vmatmul.mubr.msk.f32.gmra.mxu1 %vm81_vm1, %v2567_v14 }
  0x1d   :  { %381 = vmatprep.mubr.f32.mxu0 %v2482_v5  ;;  %470 = vmatprep.mubr.f32.mxu1 %v2482_v5 }
  0x1e   :  { %923 = vperm.xlu0 %2194, %v909_v29   ;;  %928 = vperm.xlu1 %2195, %v910_v30  }
  0x20   :  { %2126 = vmatmul.mubr.msk.f32.gmra.mxu0 %vm81_vm1, %v2588_v19  ;;  %2132 = vmatmul.mubr.msk.f32.gmra.mxu1 %vm81_vm1, %v2588_v19 }
  0x21   :  { %387 = vmatprep.mubr.f32.mxu0 %v2482_v5  ;;  %476 = vmatprep.mubr.f32.mxu1 %v2482_v5 }
  0x22   :  { %1726 = vperm.xlu0 %2194, %v1720_v31   ;;  %1731 = vperm.xlu1 %2195, %v1721_v32  }
  0x24   :  { %2127 = vmatmul.mubr.msk.f32.gmra.mxu0 %vm81_vm1, %v2607_v22  ;;  %2133 = vmatmul.mubr.msk.f32.gmra.mxu1 %vm81_vm1, %v2607_v22 }
  0x25   :  { %547 = vmatprep.mubr.f32.mxu0 %v2482_v5  ;;  %636 = vmatprep.mubr.f32.mxu1 %v2482_v5 }
  0x26   :  { %1736 = vperm.xlu0 %2194, %v1722_v33   ;;  %1741 = vperm.xlu1 %2195, %v1723_v34  }
  0x28   :  { %2136 = vmatmul.mubr.msk.f32.vlgmr.msra.gmra.mxu0 %vm81_vm1, %v2543_v7  ;;  %2142 = vmatmul.mubr.msk.f32.vlgmr.msra.gmra.mxu1 %vm81_vm1, %v2543_v7 }
  0x29   :  { %553 = vmatprep.mubr.f32.mxu0 %v2482_v5  ;;  %642 = vmatprep.mubr.f32.mxu1 %v2482_v5 }
  0x2a   :  { %2147 = vmatpush1.msk.msra.mxu0 %vm94_vm0, %v35_v23  ;;  %2153 = vmatpush1.msk.msra.mxu1 %vm94_vm0, %v36_v24 }
  0x2b   :  { %1955 = vperm.xlu0 %2194, %v1952_v35  }
  0x2c   :  { %2137 = vmatmul.mubr.msk.f32.gmra.mxu0 %vm81_vm1, %v2567_v14  ;;  %2143 = vmatmul.mubr.msk.f32.gmra.mxu1 %vm81_vm1, %v2567_v14 }
  0x2d   :  { %559 = vmatprep.mubr.f32.mxu0 %v2482_v5  ;;  %648 = vmatprep.mubr.f32.mxu1 %v2482_v5 }
  0x30   :  { %2138 = vmatmul.mubr.msk.f32.gmra.mxu0 %vm81_vm1, %v2588_v19  ;;  %2144 = vmatmul.mubr.msk.f32.gmra.mxu1 %vm81_vm1, %v2588_v19 }
  0x31   :  { %565 = vmatprep.mubr.f32.mxu0 %v2482_v5  ;;  %654 = vmatprep.mubr.f32.mxu1 %v2482_v5 }
  0x34   :  { %2139 = vmatmul.mubr.msk.f32.gmra.mxu0 %vm81_vm1, %v2607_v22  ;;  %2145 = vmatmul.mubr.msk.f32.gmra.mxu1 %vm81_vm1, %v2607_v22 }
  0x35   :  { %725 = vmatprep.mubr.f32.mxu0 %v2482_v5  ;;  %814 = vmatprep.mubr.f32.mxu1 %v2482_v5 }
  0x38   :  { %2148 = vmatmul.mubr.msk.f32.vlgmr.msra.gmra.mxu0 %vm81_vm1, %v2543_v7  ;;  %2154 = vmatmul.mubr.msk.f32.vlgmr.msra.gmra.mxu1 %vm81_vm1, %v2543_v7 }
  0x39   :  { %731 = vmatprep.mubr.f32.mxu0 %v2482_v5  ;;  %820 = vmatprep.mubr.f32.mxu1 %v2482_v5 }
  0x3c   :  { %2149 = vmatmul.mubr.msk.f32.gmra.mxu0 %vm81_vm1, %v2567_v14  ;;  %2155 = vmatmul.mubr.msk.f32.gmra.mxu1 %vm81_vm1, %v2567_v14 }
  0x3d   :  { %737 = vmatprep.mubr.f32.mxu0 %v2482_v5  ;;  %826 = vmatprep.mubr.f32.mxu1 %v2482_v5 }
  0x40   :  { %2150 = vmatmul.mubr.msk.f32.gmra.mxu0 %vm81_vm1, %v2588_v19  ;;  %2156 = vmatmul.mubr.msk.f32.gmra.mxu1 %vm81_vm1, %v2588_v19 }
  0x41   :  { %743 = vmatprep.mubr.f32.mxu0 %v2482_v5  ;;  %832 = vmatprep.mubr.f32.mxu1 %v2482_v5 }
  0x44   :  { %2151 = vmatmul.mubr.msk.f32.gmra.mxu0 %vm81_vm1, %v2607_v22  ;;  %2157 = vmatmul.mubr.msk.f32.gmra.mxu1 %vm81_vm1, %v2607_v22 }
  0x45   :  { %1008 = vmatprep.mubr.f32.mxu0 %v2482_v5  ;;  %1097 = vmatprep.mubr.f32.mxu1 %v2482_v5 }
  0x8a   :  { %v2723_v36 = vpop.permute.xlu1 %52  ;;  %v2725_v41 = vpop.permute.xlu0 %62 }
  0x8e   :  { %v2727_v42 = vpop.permute.xlu1 %47  ;;  %v2732_v52 = vpop.permute.xlu0 %57 }
  0xc8   :  { %v193_v37 = vpop.f32.mrf.mxu0  ;;  %v282_v38 = vpop.f32.mrf.mxu1 }
  0xc9   :  { %v194_v45 = vadd.f32 %v193_v37, %v2727_v42  ;;  %v283_v14 = vadd.f32 %v282_v38, %v2727_v42 }
  0xca   :  { %v195_v39 = vpop.f32.mrf.mxu0  ;;  %v284_v40 = vpop.f32.mrf.mxu1 }
  0xcb   :  { %v196_v48 = vadd.f32 %v195_v39, %v2727_v42  ;;  %2204 = vtanh.f32 %v194_v45  ;;  %v285_v11 = vadd.f32 %v284_v40, %v2727_v42 }
  0xcc   :  { %v199_v43 = vpop.f32.mrf.mxu0  ;;  %v288_v44 = vpop.f32.mrf.mxu1 }
  0xcd   :  { %v200_v49 = vadd.f32 %v199_v43, %v2723_v36  ;;  %2206 = vtanh.f32 %v196_v48  ;;  %v289_v10 = vadd.f32 %v288_v44, %v2723_v36 }
  0xce   :  { %v201_v46 = vpop.f32.mrf.mxu0  ;;  %v290_v47 = vpop.f32.mrf.mxu1 }
  0xcf   :  { %v202_v53 = vadd.f32 %v201_v46, %v2723_v36  ;;  %2208 = vtanh.f32 %v200_v49  ;;  %v291_v7 = vadd.f32 %v290_v47, %v2723_v36 }
  0xd0   :  { %v205_v50 = vpop.f32.mrf.mxu0  ;;  %v294_v51 = vpop.f32.mrf.mxu1 }
  0xd1   :  { %v206_v54 = vadd.f32 %v205_v50, %v2732_v52  ;;  %2210 = vtanh.f32 %v202_v53  ;;  %v295_v6 = vadd.f32 %v294_v51, %v2732_v52 }
  0xd2   :  { %v207_v55 = vpop.f32.mrf.mxu0  ;;  %v296_v56 = vpop.f32.mrf.mxu1 }
  0xd3   :  { %v208_v57 = vadd.f32 %v207_v55, %v2732_v52  ;;  %2212 = vtanh.f32 %v206_v54  ;;  %v297_v2 = vadd.f32 %v296_v56, %v2732_v52 }
  0xd4   :  { %v211_v58 = vpop.f32.mrf.mxu0  ;;  %v300_v59 = vpop.f32.mrf.mxu1 }
  0xd5   :  { %v212_v60 = vadd.f32 %v211_v58, %v2725_v41  ;;  %2214 = vtanh.f32 %v208_v57  ;;  %v301_v63 = vadd.f32 %v300_v59, %v2725_v41 }
  0xd6   :  { %v213_v61 = vpop.f32.mrf.mxu0  ;;  %v302_v62 = vpop.f32.mrf.mxu1 }
  0xd7   :  { %v214_v0 = vadd.f32 %v213_v61, %v2725_v41  ;;  %v303_v1 = vadd.f32 %v302_v62, %v2725_v41  ;;  %2216 = vtanh.f32 %v212_v60  ;;  %v2782_v61 = vld [vmem:[%s3233_s3] sm:$0xff] }
  0xd8   :  { %v2742_v3 = vpop.f32.mrf.mxu0  ;;  %v2744_v4 = vpop.f32.mrf.mxu1 }
  0xd9   :  { %2218 = vtanh.f32 %v214_v0  ;;  %v2755_v17 = vpop.eup %2204 }
  0xda   :  { %2220 = vtanh.f32 %v303_v1  ;;  %v373_v8 = vpop.f32.mrf.mxu0  ;;  %v2748_v9 = vpop.f32.mrf.mxu1 }
  0xdb   :  { %2222 = vtanh.f32 %v301_v63  ;;  %v2757_v18 = vpop.eup %2206  ;;  %v374_v22 = vadd.f32 %v373_v8, %v2727_v42  ;;  %v463_v1 = vadd.f32 %v2748_v9, %v2727_v42  ;;  %v461_v8 = vadd.f32 %v2744_v4, %v2727_v42 }
  0xdc   :  { %2224 = vtanh.f32 %v297_v2  ;;  %v377_v12 = vpop.f32.mrf.mxu0  ;;  %v2752_v13 = vpop.f32.mrf.mxu1 }
  0xdd   :  { %2226 = vtanh.f32 %v295_v6  ;;  %v2209_v21 = vpop.eup %2208  ;;  %v378_v24 = vadd.f32 %v377_v12, %v2723_v36  ;;  %v467_v63 = vadd.f32 %v2752_v13, %v2723_v36 }
  0xde   :  { %2228 = vtanh.f32 %v291_v7  ;;  %v379_v15 = vpop.f32.mrf.mxu0  ;;  %v468_v16 = vpop.f32.mrf.mxu1  ;;  %v372_v7 = vadd.f32 %v2742_v3, %v2727_v42  ;;  %v2806_v3 = vld [vmem:[%s3233_s3 + $0x8] sm:$0xff] }
  0xdf   :  { %2230 = vtanh.f32 %v289_v10  ;;  %v2211_v23 = vpop.eup %2210  ;;  %v380_v56 = vadd.f32 %v379_v15, %v2723_v36  ;;  %v469_v58 = vadd.f32 %v468_v16, %v2723_v36 }
  0xe0   :  { %2232 = vtanh.f32 %v285_v11  ;;  %v383_v19 = vpop.f32.mrf.mxu0  ;;  %v472_v20 = vpop.f32.mrf.mxu1 }
  0xe1   :  { %2234 = vtanh.f32 %v283_v14  ;;  %v2213_v27 = vpop.eup %2212  ;;  %v384_v49 = vadd.f32 %v383_v19, %v2732_v52  ;;  %v473_v51 = vadd.f32 %v472_v20, %v2732_v52  ;;  %v2823_v19 = vld [vmem:[%s3233_s3 + $0x10] sm:$0xff] }
  0xe2   :  { %v385_v25 = vpop.f32.mrf.mxu0  ;;  %v474_v26 = vpop.f32.mrf.mxu1  ;;  %2236 = vtanh.f32 %v374_v22 }
  0xe3   :  { %v386_v28 = vadd.f32 %v385_v25, %v2732_v52  ;;  %v2215_v29 = vpop.eup %2214  ;;  %2238 = vtanh.f32 %v378_v24  ;;  %v475_v45 = vadd.f32 %v474_v26, %v2732_v52 }
  0xe4   :  { %v389_v30 = vpop.f32.mrf.mxu0  ;;  %v478_v31 = vpop.f32.mrf.mxu1 }
  0xe5   :  { %v2217_v32 = vpop.eup %2216  ;;  %v390_v33 = vadd.f32 %v389_v30, %v2725_v41  ;;  %2240 = vtanh.f32 %v386_v28  ;;  %v479_v39 = vadd.f32 %v478_v31, %v2725_v41 }
  0xe6   :  { %v2219_v34 = vpop.eup %2218  ;;  %v391_v35 = vpop.f32.mrf.mxu0 }
  0xe7   :  { %v480_v37 = vpop.f32.mrf.mxu1  ;;  %v2221_v38 = vpop.eup %2220  ;;  %v392_v40 = vadd.f32 %v391_v35, %v2725_v41  ;;  %968 = vmatprep.subr.mxu0 %v2219_v34  ;;  %2242 = vtanh.f32 %v390_v33 }
  0xe8   :  { %v481_v43 = vadd.f32 %v480_v37, %v2725_v41  ;;  %v2223_v44 = vpop.eup %2222  ;;  %1057 = vmatprep.subr.mxu1 %v2221_v38  ;;  %v2767_v46 = vpop.f32.mrf.mxu0  ;;  %969 = vmatpush1.msra.mxu0 %v2217_v32 }
  0xe9   :  { %v2769_v47 = vpop.f32.mrf.mxu1  ;;  %v2225_v48 = vpop.eup %2224  ;;  %2244 = vtanh.f32 %v392_v40  ;;  %1058 = vmatpush1.msra.mxu1 %v2223_v44  ;;  %970 = vmatprep.subr.mxu0 %v2215_v29 }
  0xea   :  { %v2227_v50 = vpop.eup %2226  ;;  %2246 = vtanh.f32 %v481_v43  ;;  %1059 = vmatprep.subr.mxu1 %v2225_v48  ;;  %v551_v53 = vpop.f32.mrf.mxu0  ;;  %971 = vmatpush1.msra.mxu0 %v2213_v27 }
  0xeb   :  { %v2773_v54 = vpop.f32.mrf.mxu1  ;;  %v2229_v55 = vpop.eup %2228  ;;  %2248 = vtanh.f32 %v479_v39  ;;  %1060 = vmatpush1.msra.mxu1 %v2227_v50  ;;  %972 = vmatprep.subr.mxu0 %v2211_v23  ;;  %v552_v14 = vadd.f32 %v551_v53, %v2727_v42  ;;  %v2847_v39 = vld [vmem:[%s3233_s3 + $0x18] sm:$0xff]  ;;  %s2485_s3 = smov [#allocation3]  }
  0xec   :  { %v2231_v57 = vpop.eup %2230  ;;  %2250 = vtanh.f32 %v475_v45  ;;  %1061 = vmatprep.subr.mxu1 %v2229_v55  ;;  %v555_v59 = vpop.f32.mrf.mxu0  ;;  %973 = vmatpush1.msra.mxu0 %v2209_v21  ;;  %s2102_s29 = sshll.u32 %s2485_s3, 4  ;;  %s2103_s29 = int_to_ptr.vmem [resolvable:$true] %s2102_s29 }
  0xed   :  { %v2777_v60 = vpop.f32.mrf.mxu1  ;;  %v2233_v62 = vpop.eup %2232  ;;  %2252 = vtanh.f32 %v384_v49  ;;  %1062 = vmatpush1.msra.mxu1 %v2231_v57  ;;  %974 = vmatprep.subr.mxu0 %v2757_v18  ;;  %v556_v16 = vadd.f32 %v555_v59, %v2723_v36  ;;  %s2460_s30 = scalar_lea.vmem %s2103_s29, 256  ;;  %p2465_p1 = scmp.lt.s32.totalorder %s2103_s29, %s2103_s29 }
  0xee   :  { %v2235_v0 = vpop.eup %2234  ;;  %2254 = vtanh.f32 %v473_v51  ;;  %1063 = vmatprep.subr.mxu1 %v2233_v62  ;;  %v2789_v2 = vpop.f32.mrf.mxu0  ;;  %975 = vmatpush1.msra.mxu0 %v2755_v17  ;;  %v645_v59 = vadd.f32 %v2777_v60, %v2723_v36  ;;  %v639_v60 = vadd.f32 %v2769_v47, %v2727_v42  ;;  %p2461_p0 = scmp.ne.s32.totalorder %s2103_s29, %s2460_s30  ;;  %p2466_p2 = scmp.lt.s32.totalorder %s2460_s30, %s2460_s30 }
  0xef   :  { %v2791_v6 = vpop.f32.mrf.mxu1  ;;  %2256 = vtanh.f32 %v380_v56  ;;  %1064 = vmatpush1.msra.mxu1 %v2235_v0  ;;  %2158 = vmatmul.mubr.msk.f32.vlgmr.msra.gmra.mxu0 %vm931_vm2, %v2782_v61  ;;  %v2809_v11 = vpop.eup %2236  ;;  %v558_v51 = vadd.f32 %v2789_v2, %v2723_v36 }
  0xf0   :  { %2258 = vtanh.f32 %v469_v58  ;;  %2162 = vmatmul.mubr.msk.f32.vlgmr.msra.gmra.mxu1 %vm931_vm2, %v2782_v61  ;;  %v561_v9 = vpop.f32.mrf.mxu0  ;;  %1014 = vmatprep.mubr.f32.mxu0 %v2482_v5  ;;  %v2811_v13 = vpop.eup %2238  ;;  %v647_v55 = vadd.f32 %v2791_v6, %v2723_v36  ;;  %v550_v6 = vadd.f32 %v2767_v46, %v2727_v42  ;;  %p2467_p3 = por %p2466_p2, %p2465_p1 }
  0xf1   :  { %v650_v10 = vpop.f32.mrf.mxu1  ;;  %2260 = vtanh.f32 %v467_v63  ;;  %1103 = vmatprep.mubr.f32.mxu1 %v2482_v5  ;;  %v562_v43 = vadd.f32 %v561_v9, %v2732_v52  ;;  %v641_v63 = vadd.f32 %v2773_v54, %v2727_v42 }
  0xf2   :  { %2262 = vtanh.f32 %v463_v1  ;;  %v563_v4 = vpop.f32.mrf.mxu0  ;;  %v2241_v15 = vpop.eup %2240  ;;  %v651_v45 = vadd.f32 %v650_v10, %v2732_v52  ;;  %p2468_p4 = pnand %p2467_p3, %p2461_p0 }
  0xf3   :  { %v652_v12 = vpop.f32.mrf.mxu1  ;;  %2264 = vtanh.f32 %v372_v7  ;;  %2159 = vmatmul.mubr.msk.f32.gmra.mxu0 %vm931_vm2, %v2806_v3  ;;  %v564_v33 = vadd.f32 %v563_v4, %v2732_v52 }
  0xf4   :  { %2266 = vtanh.f32 %v461_v8  ;;  %2163 = vmatmul.mubr.msk.f32.gmra.mxu1 %vm931_vm2, %v2806_v3  ;;  %v567_v17 = vpop.f32.mrf.mxu0  ;;  %1020 = vmatprep.mubr.f32.mxu0 %v2482_v5  ;;  %v2243_v20 = vpop.eup %2242  ;;  %v653_v35 = vadd.f32 %v652_v12, %v2732_v52 }
  0xf5   :  { %v656_v18 = vpop.f32.mrf.mxu1  ;;  %1109 = vmatprep.mubr.f32.mxu1 %v2482_v5  ;;  %2268 = vtanh.f32 %v552_v14  ;;  %v568_v25 = vadd.f32 %v567_v17, %v2725_v41 }
  0xf6   :  { %v2245_v21 = vpop.eup %2244  ;;  %v569_v22 = vpop.f32.mrf.mxu0  ;;  %2270 = vtanh.f32 %v556_v16  ;;  %v657_v29 = vadd.f32 %v656_v18, %v2725_v41 }
  0xf7   :  { %v658_v23 = vpop.f32.mrf.mxu1  ;;  %v2247_v24 = vpop.eup %2246  ;;  %v570_v26 = vadd.f32 %v569_v22, %v2725_v41  ;;  %2160 = vmatmul.mubr.msk.f32.gmra.mxu0 %vm931_vm2, %v2823_v19  ;;  %1146 = vmatprep.subr.mxu0 %v2245_v21 }
  0xf8   :  { %v659_v27 = vadd.f32 %v658_v23, %v2725_v41  ;;  %v2249_v28 = vpop.eup %2248  ;;  %2164 = vmatmul.mubr.msk.f32.gmra.mxu1 %vm931_vm2, %v2823_v19  ;;  %1235 = vmatprep.subr.mxu1 %v2247_v24  ;;  %v2834_v30 = vpop.f32.mrf.mxu0 }
  0xf9   :  { %v2836_v31 = vpop.f32.mrf.mxu1  ;;  %v2251_v32 = vpop.eup %2250  ;;  %2272 = vtanh.f32 %v570_v26  ;;  %1147 = vmatpush1.msra.mxu0 %v2243_v20  ;;  %1236 = vmatpush1.msra.mxu1 %v2249_v28  ;;  %v728_v8 = vadd.f32 %v2834_v30, %v2727_v42 }
  0xfa   :  { %v2253_v34 = vpop.eup %2252  ;;  %2274 = vtanh.f32 %v659_v27  ;;  %1148 = vmatprep.subr.mxu0 %v2241_v15  ;;  %1237 = vmatprep.subr.mxu1 %v2251_v32  ;;  %v2840_v37 = vpop.f32.mrf.mxu0 }
  0xfb   :  { %v2842_v38 = vpop.f32.mrf.mxu1  ;;  %v2255_v40 = vpop.eup %2254  ;;  %2276 = vtanh.f32 %v568_v25  ;;  %1026 = vmatprep.mubr.f32.mxu0 %v2482_v5  ;;  %1115 = vmatprep.mubr.f32.mxu1 %v2482_v5 }
  0xfc   :  { %v2257_v44 = vpop.eup %2256  ;;  %2278 = vtanh.f32 %v657_v29  ;;  %1149 = vmatpush1.msra.mxu0 %v2253_v34  ;;  %1238 = vmatpush1.msra.mxu1 %v2255_v40  ;;  %v2853_v48 = vpop.f32.mrf.mxu0  ;;  %v730_v34 = vadd.f32 %v2840_v37, %v2727_v42 }
  0xfd   :  { %v2855_v49 = vpop.f32.mrf.mxu1  ;;  %v2259_v50 = vpop.eup %2258  ;;  %2280 = vtanh.f32 %v564_v33  ;;  %2161 = vmatmul.mubr.msk.f32.gmra.mxu0 %vm931_vm2, %v2847_v39  ;;  %2165 = vmatmul.mubr.msk.f32.gmra.mxu1 %vm931_vm2, %v2847_v39  ;;  %v734_v26 = vadd.f32 %v2853_v48, %v2723_v36 }
  0xfe   :  { %v2261_v53 = vpop.eup %2260  ;;  %2282 = vtanh.f32 %v653_v35  ;;  %1150 = vmatprep.subr.mxu0 %v2257_v44  ;;  %1239 = vmatprep.subr.mxu1 %v2259_v50  ;;  %v2865_v56 = vpop.f32.mrf.mxu0  ;;  %v823_v35 = vadd.f32 %v2855_v49, %v2723_v36  ;;  %v817_v44 = vadd.f32 %v2836_v31, %v2727_v42 }
  0xff   :  { %v2867_v57 = vpop.f32.mrf.mxu1  ;;  %v2263_v58 = vpop.eup %2262  ;;  %2284 = vtanh.f32 %v562_v43  ;;  %1151 = vmatpush1.msra.mxu0 %v2811_v13  ;;  %1240 = vmatpush1.msra.mxu1 %v2261_v53  ;;  %v736_v27 = vadd.f32 %v2865_v56, %v2723_v36  ;;  %v819_v43 = vadd.f32 %v2842_v38, %v2727_v42 }
 0x100   :  { %v2265_v62 = vpop.eup %2264  ;;  %2286 = vtanh.f32 %v651_v45  ;;  %1152 = vmatprep.subr.mxu0 %v2809_v11  ;;  %1241 = vmatprep.subr.mxu1 %v2263_v58  ;;  %v739_v0 = vpop.f32.mrf.mxu0  ;;  %v825_v32 = vadd.f32 %v2867_v57, %v2723_v36 }
 0x101   :  { %v828_v1 = vpop.f32.mrf.mxu1  ;;  %v2267_v2 = vpop.eup %2266  ;;  %2288 = vtanh.f32 %v558_v51  ;;  %1153 = vmatpush1.msra.mxu0 %v2265_v62  ;;  %1186 = vmatprep.mubr.f32.mxu0 %v2482_v5  ;;  %v740_v15 = vadd.f32 %v739_v0, %v2732_v52 }
 0x102   :  { %2290 = vtanh.f32 %v647_v55  ;;  %1242 = vmatpush1.msra.mxu1 %v2267_v2  ;;  %1275 = vmatprep.mubr.f32.mxu1 %v2482_v5  ;;  %v741_v54 = vpop.f32.mrf.mxu0  ;;  %v2887_v46 = vpop.eup %2268  ;;  %v829_v29 = vadd.f32 %v828_v1, %v2732_v52 }
 0x103   :  { %v830_v7 = vpop.f32.mrf.mxu1  ;;  %2292 = vtanh.f32 %v645_v59  ;;  %2166 = vmatmul.mubr.msk.f32.vlgmr.msra.gmra.mxu0 %vm931_vm2, %v2782_v61  ;;  %2170 = vmatmul.mubr.msk.f32.vlgmr.msra.gmra.mxu1 %vm931_vm2, %v2782_v61  ;;  %v2271_v10 = vpop.eup %2270  ;;  %v742_v20 = vadd.f32 %v741_v54, %v2732_v52 }
 0x104   :  { %2294 = vtanh.f32 %v641_v63  ;;  %1192 = vmatprep.mubr.f32.mxu0 %v2482_v5  ;;  %1281 = vmatprep.mubr.f32.mxu1 %v2482_v5  ;;  %v745_v47 = vpop.f32.mrf.mxu0  ;;  %v831_v24 = vadd.f32 %v830_v7, %v2732_v52 }
 0x105   :  { %v834_v9 = vpop.f32.mrf.mxu1  ;;  %2296 = vtanh.f32 %v550_v6  ;;  %v746_v11 = vadd.f32 %v745_v47, %v2725_v41 }
 0x106   :  { %v2273_v4 = vpop.eup %2272  ;;  %2298 = vtanh.f32 %v639_v60  ;;  %v747_v12 = vpop.f32.mrf.mxu0  ;;  %v835_v22 = vadd.f32 %v834_v9, %v2725_v41 }
 0x107   :  { %v836_v13 = vpop.f32.mrf.mxu1  ;;  %v2275_v14 = vpop.eup %2274  ;;  %2300 = vtanh.f32 %v728_v8  ;;  %2167 = vmatmul.mubr.msk.f32.gmra.mxu0 %vm931_vm2, %v2806_v3  ;;  %2171 = vmatmul.mubr.msk.f32.gmra.mxu1 %vm931_vm2, %v2806_v3  ;;  %v748_v16 = vadd.f32 %v747_v12, %v2725_v41 }
 0x108   :  { %v837_v17 = vadd.f32 %v836_v13, %v2725_v41  ;;  %v2277_v18 = vpop.eup %2276  ;;  %2302 = vtanh.f32 %v746_v11  ;;  %1198 = vmatprep.mubr.f32.mxu0 %v2482_v5  ;;  %1287 = vmatprep.mubr.f32.mxu1 %v2482_v5 }
 0x109   :  { %v2279_v21 = vpop.eup %2278  ;;  %2304 = vtanh.f32 %v748_v16  ;;  %1324 = vmatprep.subr.mxu0 %v2273_v4  ;;  %1413 = vmatprep.subr.mxu1 %v2275_v14 }
 0x10a   :  { %v2281_v23 = vpop.eup %2280  ;;  %2306 = vtanh.f32 %v837_v17  ;;  %1325 = vmatpush1.msra.mxu0 %v2277_v18  ;;  %1414 = vmatpush1.msra.mxu1 %v2279_v21 }
 0x10b   :  { %v2283_v25 = vpop.eup %2282  ;;  %2308 = vtanh.f32 %v740_v15  ;;  %2168 = vmatmul.mubr.msk.f32.gmra.mxu0 %vm931_vm2, %v2823_v19  ;;  %2172 = vmatmul.mubr.msk.f32.gmra.mxu1 %vm931_vm2, %v2823_v19 }
 0x10c   :  { %v2285_v41 = vpop.eup %2284  ;;  %2310 = vtanh.f32 %v742_v20  ;;  %1326 = vmatprep.subr.mxu0 %v2281_v23  ;;  %1415 = vmatprep.subr.mxu1 %v2283_v25  ;;  %v2484_v23 = vmov 1966171168  }
 0x10d   :  { %v2287_v28 = vpop.eup %2286  ;;  %2312 = vtanh.f32 %v835_v22  ;;  %1204 = vmatprep.mubr.f32.mxu0 %v2482_v5  ;;  %1293 = vmatprep.mubr.f32.mxu1 %v2482_v5  ;;  %v1958_v22 = vlaneseq }
 0x10e   :  { %v2289_v30 = vpop.eup %2288  ;;  %2314 = vtanh.f32 %v831_v24  ;;  %1327 = vmatpush1.msra.mxu0 %v2285_v41  ;;  %1416 = vmatpush1.msra.mxu1 %v2287_v28  ;;  %v1999_v24 = vunpack.c.l.s4 %v2484_v23 }
 0x10f   :  { %v2291_v33 = vpop.eup %2290  ;;  %2316 = vtanh.f32 %v734_v26  ;;  %2169 = vmatmul.mubr.msk.f32.gmra.mxu0 %vm931_vm2, %v2847_v39  ;;  %2173 = vmatmul.mubr.msk.f32.gmra.mxu1 %vm931_vm2, %v2847_v39 }
 0x110   :  { %v2293_v52 = vpop.eup %2292  ;;  %2318 = vtanh.f32 %v736_v27  ;;  %1328 = vmatprep.subr.mxu0 %v2289_v30  ;;  %1417 = vmatprep.subr.mxu1 %v2291_v33 }
 0x111   :  { %v2295_v40 = vpop.eup %2294  ;;  %2320 = vtanh.f32 %v829_v29  ;;  %1329 = vmatpush1.msra.mxu0 %v2271_v10  ;;  %1418 = vmatpush1.msra.mxu1 %v2293_v52 }
 0x112   :  { %v2297_v37 = vpop.eup %2296  ;;  %2322 = vtanh.f32 %v825_v32  ;;  %1330 = vmatprep.subr.mxu0 %v2887_v46  ;;  %1419 = vmatprep.subr.mxu1 %v2295_v40  ;;  %v2000_v40 = vunpack.c.0.s8 %v1999_v24 }
 0x113   :  { %v2299_v45 = vpop.eup %2298  ;;  %2324 = vtanh.f32 %v730_v34  ;;  %1331 = vmatpush1.msra.mxu0 %v2297_v37  ;;  %1364 = vmatprep.mubr.f32.mxu0 %v2482_v5 }
 0x114   :  { %v2301_v36 = vpop.eup %2300  ;;  %2326 = vtanh.f32 %v823_v35  ;;  %1420 = vmatpush1.msra.mxu1 %v2299_v45  ;;  %1453 = vmatprep.mubr.f32.mxu1 %v2482_v5  ;;  %v3002_v35 = vshrl.u32 %v1958_v22, 7 }
 0x115   :  { %v2303_v38 = vpop.eup %2302  ;;  %2328 = vtanh.f32 %v819_v43  ;;  %2174 = vmatmul.mubr.msk.f32.vlgmr.msra.gmra.mxu0 %vm931_vm2, %v2782_v61  ;;  %2178 = vmatmul.mubr.msk.f32.vlgmr.msra.gmra.mxu1 %vm931_vm2, %v2782_v61 }
 0x116   :  { %v2305_v42 = vpop.eup %2304  ;;  %2330 = vtanh.f32 %v817_v44  ;;  %1370 = vmatprep.mubr.f32.mxu0 %v2482_v5  ;;  %1459 = vmatprep.mubr.f32.mxu1 %v2482_v5 }
 0x117   :  { %v2307_v31 = vpop.eup %2306  ;;  %1502 = vmatprep.subr.mxu0 %v2305_v42 }
 0x118   :  { %v2309_v48 = vpop.eup %2308  ;;  %1591 = vmatprep.subr.mxu1 %v2307_v31  ;;  %1503 = vmatpush1.msra.mxu0 %v2303_v38 }
 0x119   :  { %v2311_v49 = vpop.eup %2310  ;;  %2175 = vmatmul.mubr.msk.f32.gmra.mxu0 %vm931_vm2, %v2806_v3  ;;  %2179 = vmatmul.mubr.msk.f32.gmra.mxu1 %vm931_vm2, %v2806_v3 }
 0x11a   :  { %v2313_v50 = vpop.eup %2312  ;;  %1376 = vmatprep.mubr.f32.mxu0 %v2482_v5  ;;  %1465 = vmatprep.mubr.f32.mxu1 %v2482_v5 }
 0x11b   :  { %v2315_v51 = vpop.eup %2314  ;;  %1592 = vmatpush1.msra.mxu1 %v2313_v50  ;;  %1504 = vmatprep.subr.mxu0 %v2311_v49  ;;  %v1960_v50 = vsub.s32 0, %v3002_v35 }
 0x11c   :  { %v2317_v53 = vpop.eup %2316  ;;  %1593 = vmatprep.subr.mxu1 %v2315_v51  ;;  %1505 = vmatpush1.msra.mxu0 %v2309_v48  ;;  %v3012_v51 = vsub.s32 %v2000_v40, %v3002_v35 }
 0x11d   :  { %v2319_v55 = vpop.eup %2318  ;;  %2176 = vmatmul.mubr.msk.f32.gmra.mxu0 %vm931_vm2, %v2823_v19  ;;  %2180 = vmatmul.mubr.msk.f32.gmra.mxu1 %vm931_vm2, %v2823_v19 }
 0x11e   :  { %v2321_v56 = vpop.eup %2320  ;;  %1382 = vmatprep.mubr.f32.mxu0 %v2482_v5  ;;  %1471 = vmatprep.mubr.f32.mxu1 %v2482_v5 }
 0x11f   :  { %v2323_v57 = vpop.eup %2322  ;;  %1594 = vmatpush1.msra.mxu1 %v2321_v56  ;;  %1506 = vmatprep.subr.mxu0 %v2319_v55 }
 0x120   :  { %v2325_v58 = vpop.eup %2324  ;;  %1595 = vmatprep.subr.mxu1 %v2323_v57  ;;  %1507 = vmatpush1.msra.mxu0 %v2317_v53 }
 0x121   :  { %v2327_v59 = vpop.eup %2326  ;;  %2177 = vmatmul.mubr.msk.f32.gmra.mxu0 %vm931_vm2, %v2847_v39  ;;  %2181 = vmatmul.mubr.msk.f32.gmra.mxu1 %vm931_vm2, %v2847_v39 }
 0x122   :  { %v2329_v62 = vpop.eup %2328  ;;  %1596 = vmatpush1.msra.mxu1 %v2327_v59  ;;  %1508 = vmatprep.subr.mxu0 %v2325_v58 }
 0x123   :  { %v2331_v63 = vpop.eup %2330  ;;  %1597 = vmatprep.subr.mxu1 %v2329_v62  ;;  %1509 = vmatpush1.msra.mxu0 %v2301_v36 }
 0x124   :  { %1542 = vmatprep.mubr.f32.mxu0 %v2482_v5  ;;  %1598 = vmatpush1.msra.mxu1 %v2331_v63 }
 0x125   :  { %1631 = vmatprep.mubr.f32.mxu1 %v2482_v5  ;;  %2182 = vmatmul.mubr.msk.f32.vlgmr.msra.gmra.mxu0 %vm931_vm2, %v2782_v61 }
 0x126   :  { %2186 = vmatmul.mubr.msk.f32.vlgmr.msra.gmra.mxu1 %vm931_vm2, %v2782_v61  ;;  %1548 = vmatprep.mubr.f32.mxu0 %v2482_v5  ;;  %v2978_v61 = vpop.permute.xlu0 %913 }
 0x127   :  { %1637 = vmatprep.mubr.f32.mxu1 %v2482_v5 }
 0x129   :  { %2183 = vmatmul.mubr.msk.f32.gmra.mxu0 %vm931_vm2, %v2806_v3 }
 0x12a   :  { %2187 = vmatmul.mubr.msk.f32.gmra.mxu1 %vm931_vm2, %v2806_v3  ;;  %1554 = vmatprep.mubr.f32.mxu0 %v2482_v5  ;;  %v2989_v11 = vpop.permute.xlu0 %923 }
 0x12b   :  { %1643 = vmatprep.mubr.f32.mxu1 %v2482_v5 }
 0x12d   :  { %2184 = vmatmul.mubr.msk.f32.gmra.mxu0 %vm931_vm2, %v2823_v19 }
 0x12e   :  { %2188 = vmatmul.mubr.msk.f32.gmra.mxu1 %vm931_vm2, %v2823_v19  ;;  %1560 = vmatprep.mubr.f32.mxu0 %v2482_v5  ;;  %v3004_v37 = vpop.permute.xlu0 %1726 }
 0x12f   :  { %1649 = vmatprep.mubr.f32.mxu1 %v2482_v5  ;;  %v2983_v5 = vpop.permute.xlu1 %918 }
 0x131   :  { %2185 = vmatmul.mubr.msk.f32.gmra.mxu0 %vm931_vm2, %v2847_v39 }
 0x132   :  { %2189 = vmatmul.mubr.msk.f32.gmra.mxu1 %vm931_vm2, %v2847_v39 }
 0x133   :  { %v2996_v21 = vpop.permute.xlu1 %928 }
 0x137   :  { %v3006_v42 = vpop.permute.xlu1 %1731 }
 0x13b   :  { %v3034_v24 = vpop.permute.xlu1 %1741 }
 0x1af   :  { %v1010_v3 = vpop.f32.mrf.mxu0 }
 0x1b0   :  { %v1011_v0 = vadd.f32 %v1010_v3, %v2978_v61  ;;  %v1099_v1 = vpop.f32.mrf.mxu1 }
 0x1b1   :  { %v1100_v2 = vadd.f32 %v1099_v1, %v2978_v61  ;;  %v1012_v6 = vpop.f32.mrf.mxu0 }
 0x1b2   :  { %2332 = vtanh.f32 %v1011_v0  ;;  %v1013_v19 = vadd.f32 %v1012_v6, %v2978_v61  ;;  %v1101_v60 = vpop.f32.mrf.mxu1 }
 0x1b3   :  { %2334 = vtanh.f32 %v1100_v2  ;;  %v1102_v54 = vadd.f32 %v1101_v60, %v2978_v61  ;;  %v1016_v7 = vpop.f32.mrf.mxu0 }
 0x1b4   :  { %2336 = vtanh.f32 %v1013_v19  ;;  %v1017_v39 = vadd.f32 %v1016_v7, %v2983_v5  ;;  %v1105_v8 = vpop.f32.mrf.mxu1 }
 0x1b5   :  { %2338 = vtanh.f32 %v1102_v54  ;;  %v1106_v46 = vadd.f32 %v1105_v8, %v2983_v5  ;;  %v1018_v47 = vpop.f32.mrf.mxu0  ;;  %v3022_v54 = vpop.permute.xlu0 %1736 }
 0x1b6   :  { %2340 = vtanh.f32 %v1017_v39  ;;  %v1019_v9 = vadd.f32 %v1018_v47, %v2983_v5  ;;  %v1107_v10 = vpop.f32.mrf.mxu1 }
 0x1b7   :  { %2342 = vtanh.f32 %v1106_v46  ;;  %v1108_v4 = vadd.f32 %v1107_v10, %v2983_v5  ;;  %v1022_v12 = vpop.f32.mrf.mxu0 }
 0x1b8   :  { %2344 = vtanh.f32 %v1019_v9  ;;  %v1023_v13 = vadd.f32 %v1022_v12, %v2989_v11  ;;  %v1111_v14 = vpop.f32.mrf.mxu1 }
 0x1b9   :  { %2346 = vtanh.f32 %v1108_v4  ;;  %v1112_v15 = vadd.f32 %v1111_v14, %v2989_v11  ;;  %v1024_v16 = vpop.f32.mrf.mxu0 }
 0x1ba   :  { %2348 = vtanh.f32 %v1023_v13  ;;  %v1025_v17 = vadd.f32 %v1024_v16, %v2989_v11  ;;  %v1113_v18 = vpop.f32.mrf.mxu1 }
 0x1bb   :  { %2350 = vtanh.f32 %v1112_v15  ;;  %v1114_v20 = vadd.f32 %v1113_v18, %v2989_v11 }
 0x1bc   :  { %2352 = vtanh.f32 %v1025_v17 }
 0x1bd   :  { %2354 = vtanh.f32 %v1114_v20  ;;  %v1028_v25 = vpop.f32.mrf.mxu0  ;;  %v1117_v26 = vpop.f32.mrf.mxu1 }
 0x1be   :  { %v1029_v41 = vadd.f32 %v1028_v25, %v2996_v21  ;;  %v1118_v27 = vadd.f32 %v1117_v26, %v2996_v21 }
 0x1bf   :  { %v2333_v28 = vpop.eup %2332  ;;  %v1030_v29 = vpop.f32.mrf.mxu0 }
 0x1c0   :  { %v1119_v30 = vpop.f32.mrf.mxu1  ;;  %v2335_v32 = vpop.eup %2334  ;;  %2356 = vtanh.f32 %v1029_v41  ;;  %v1031_v33 = vadd.f32 %v1030_v29, %v2996_v21  ;;  %v1744_v53 = vmul.f32 %v2333_v28, %v3004_v37 }
 0x1c1   :  { %v1120_v34 = vadd.f32 %v1119_v30, %v2996_v21  ;;  %v2337_v52 = vpop.eup %2336  ;;  %2358 = vtanh.f32 %v1118_v27  ;;  %v1746_v55 = vmul.f32 %v2335_v32, %v3004_v37 }
 0x1c2   :  { %v2339_v43 = vpop.eup %2338  ;;  %2360 = vtanh.f32 %v1031_v33  ;;  %v1745_v0 = vmul.f32 %v2337_v52, %v3004_v37 }
 0x1c3   :  { %v2341_v44 = vpop.eup %2340  ;;  %2362 = vtanh.f32 %v1120_v34  ;;  %v1188_v45 = vpop.f32.mrf.mxu0  ;;  %v1747_v1 = vmul.f32 %v2339_v43, %v3004_v37 }
 0x1c4   :  { %v1277_v36 = vpop.f32.mrf.mxu1  ;;  %v2343_v38 = vpop.eup %2342  ;;  %v1189_v31 = vadd.f32 %v1188_v45, %v2978_v61  ;;  %v1760_v59 = vmul.f32 %v2341_v44, %v3006_v42 }
 0x1c5   :  { %v1278_v48 = vadd.f32 %v1277_v36, %v2978_v61  ;;  %v2345_v49 = vpop.eup %2344  ;;  %v1190_v56 = vpop.f32.mrf.mxu0  ;;  %v1762_v62 = vmul.f32 %v2343_v38, %v3006_v42 }
 0x1c6   :  { %v1279_v57 = vpop.f32.mrf.mxu1  ;;  %v2347_v58 = vpop.eup %2346  ;;  %2364 = vtanh.f32 %v1189_v31  ;;  %v1191_v63 = vadd.f32 %v1190_v56, %v2978_v61  ;;  %v1761_v7 = vmul.f32 %v2345_v49, %v3006_v42  ;;  %v1808_v14 = vadd.f32 %v1760_v59, %v1744_v53 }
 0x1c7   :  { %v2349_v3 = vpop.eup %2348  ;;  %2366 = vtanh.f32 %v1278_v48  ;;  %v1280_v2 = vadd.f32 %v1279_v57, %v2978_v61  ;;  %v1194_v6 = vpop.f32.mrf.mxu0  ;;  %v1763_v39 = vmul.f32 %v2347_v58, %v3006_v42  ;;  %v1826_v15 = vadd.f32 %v1762_v62, %v1746_v55 }
 0x1c8   :  { %v1283_v19 = vpop.f32.mrf.mxu1  ;;  %v2351_v60 = vpop.eup %2350  ;;  %2368 = vtanh.f32 %v1191_v63  ;;  %v1195_v8 = vadd.f32 %v1194_v6, %v2983_v5  ;;  %v1776_v47 = vmul.f32 %v2349_v3, %v3022_v54  ;;  %v1817_v25 = vadd.f32 %v1761_v7, %v1745_v0 }
 0x1c9   :  { %v2353_v46 = vpop.eup %2352  ;;  %v1778_v9 = vmul.f32 %v2351_v60, %v3022_v54  ;;  %2370 = vtanh.f32 %v1280_v2  ;;  %v1284_v10 = vadd.f32 %v1283_v19, %v2983_v5  ;;  %v1196_v4 = vpop.f32.mrf.mxu0  ;;  %v1835_v28 = vadd.f32 %v1763_v39, %v1747_v1 }
 0x1ca   :  { %v1285_v12 = vpop.f32.mrf.mxu1  ;;  %v2355_v13 = vpop.eup %2354  ;;  %2372 = vtanh.f32 %v1195_v8  ;;  %v1197_v16 = vadd.f32 %v1196_v4, %v2983_v5  ;;  %v1777_v17 = vmul.f32 %v2353_v46, %v3022_v54  ;;  %v1809_v29 = vadd.f32 %v1808_v14, %v1776_v47 }
 0x1cb   :  { %v1779_v18 = vmul.f32 %v2355_v13, %v3022_v54  ;;  %2374 = vtanh.f32 %v1284_v10  ;;  %v1286_v20 = vadd.f32 %v1285_v12, %v2983_v5  ;;  %v1200_v22 = vpop.f32.mrf.mxu0  ;;  %v1827_v30 = vadd.f32 %v1826_v15, %v1778_v9  ;;  %v1956_v53 = vpop.permute.xlu0 %1955 }
 0x1cc   :  { %v1289_v23 = vpop.f32.mrf.mxu1  ;;  %2376 = vtanh.f32 %v1197_v16  ;;  %v1201_v26 = vadd.f32 %v1200_v22, %v2989_v11  ;;  %v1818_v45 = vadd.f32 %v1817_v25, %v1777_v17  ;;  %v3050_v8 = vrot.slane %v1956_v53, %v1960_v50 }
 0x1cd   :  { %v1290_v41 = vadd.f32 %v1289_v23, %v2989_v11  ;;  %v2357_v27 = vpop.eup %2356  ;;  %2378 = vtanh.f32 %v1286_v20  ;;  %v1202_v32 = vpop.f32.mrf.mxu0  ;;  %v1836_v36 = vadd.f32 %v1835_v28, %v1779_v18 }
 0x1ce   :  { %v1291_v33 = vpop.f32.mrf.mxu1  ;;  %v2359_v34 = vpop.eup %2358  ;;  %v1792_v52 = vmul.f32 %v2357_v27, %v3034_v24  ;;  %2380 = vtanh.f32 %v1201_v26  ;;  %v1203_v40 = vadd.f32 %v1202_v32, %v2989_v11 }
 0x1cf   :  { %v1292_v43 = vadd.f32 %v1291_v33, %v2989_v11  ;;  %v2361_v44 = vpop.eup %2360  ;;  %v1794_v38 = vmul.f32 %v2359_v34, %v3034_v24  ;;  %2382 = vtanh.f32 %v1290_v41  ;;  %v1206_v31 = vpop.f32.mrf.mxu0 }
 0x1d0   :  { %v1295_v48 = vpop.f32.mrf.mxu1  ;;  %v2363_v49 = vpop.eup %2362  ;;  %v1810_v55 = vadd.f32 %v1809_v29, %v1792_v52  ;;  %v1793_v56 = vmul.f32 %v2361_v44, %v3034_v24  ;;  %2384 = vtanh.f32 %v1203_v40  ;;  %v1207_v57 = vadd.f32 %v1206_v31, %v2996_v21 }
 0x1d1   :  { %v1828_v58 = vadd.f32 %v1827_v30, %v1794_v38  ;;  %v1795_v59 = vmul.f32 %v2363_v49, %v3034_v24  ;;  %2386 = vtanh.f32 %v1292_v43  ;;  %v1296_v62 = vadd.f32 %v1295_v48, %v2996_v21  ;;  %v1208_v63 = vpop.f32.mrf.mxu0 }
 0x1d2   :  { %v1297_v3 = vpop.f32.mrf.mxu1  ;;  %v1811_v0 = vrot.slane %v1810_v55, 4  ;;  %v1819_v1 = vadd.f32 %v1818_v45, %v1793_v56  ;;  %2388 = vtanh.f32 %v1207_v57  ;;  %v1209_v2 = vadd.f32 %v1208_v63, %v2996_v21 }
 0x1d3   :  { %v2365_v6 = vpop.eup %2364  ;;  %v1829_v19 = vrot.slane %v1828_v58, 4  ;;  %v1837_v60 = vadd.f32 %v1836_v36, %v1795_v59  ;;  %2390 = vtanh.f32 %v1296_v62  ;;  %v1298_v7 = vadd.f32 %v1297_v3, %v2996_v21 }
 0x1d4   :  { %v2367_v39 = vpop.eup %2366  ;;  %v1812_v46 = vadd.f32 %v1811_v0, %v1810_v55  ;;  %v1820_v47 = vrot.slane %v1819_v1, 4  ;;  %2392 = vtanh.f32 %v1209_v2  ;;  %v1748_v12 = vmul.f32 %v2365_v6, %v3004_v37 }
 0x1d5   :  { %v2369_v9 = vpop.eup %2368  ;;  %v3052_v10 = vadd.f32 %v1829_v19, %v1828_v58  ;;  %v1838_v4 = vrot.slane %v1837_v60, 4  ;;  %2394 = vtanh.f32 %v1298_v7  ;;  %v1366_v13 = vpop.f32.mrf.mxu0  ;;  %v1750_v17 = vmul.f32 %v2367_v39, %v3004_v37 }
 0x1d6   :  { %v1455_v14 = vpop.f32.mrf.mxu1  ;;  %v2371_v15 = vpop.eup %2370  ;;  %v3055_v16 = vadd.f32 %v1820_v47, %v1819_v1  ;;  %v1367_v35 = vadd.f32 %v1366_v13, %v2978_v61  ;;  %v1749_v22 = vmul.f32 %v2369_v9, %v3004_v37  ;;  %v1813_v41 = vrot.slane %v1812_v46, 2 }
 0x1d7   :  { %v1456_v50 = vadd.f32 %v1455_v14, %v2978_v61  ;;  %v2373_v18 = vpop.eup %2372  ;;  %v3060_v20 = vadd.f32 %v1838_v4, %v1837_v60  ;;  %v1751_v23 = vmul.f32 %v2371_v15, %v3004_v37  ;;  %v1368_v25 = vpop.f32.mrf.mxu0  ;;  %v1831_v43 = vrot.slane %v3052_v10, 2 }
 0x1d8   :  { %v1457_v26 = vpop.f32.mrf.mxu1  ;;  %v2375_v27 = vpop.eup %2374  ;;  %v1764_v28 = vmul.f32 %v2373_v18, %v3006_v42  ;;  %2396 = vtanh.f32 %v1367_v35  ;;  %v1369_v29 = vadd.f32 %v1368_v25, %v2978_v61  ;;  %v3068_v40 = vadd.f32 %v1813_v41, %v1812_v46 }
 0x1d9   :  { %v1458_v30 = vadd.f32 %v1457_v26, %v2978_v61  ;;  %v2377_v32 = vpop.eup %2376  ;;  %v1766_v33 = vmul.f32 %v2375_v27, %v3006_v42  ;;  %2398 = vtanh.f32 %v1456_v50  ;;  %v1372_v34 = vpop.f32.mrf.mxu0 }
 0x1da   :  { %v1461_v52 = vpop.f32.mrf.mxu1  ;;  %v2379_v44 = vpop.eup %2378  ;;  %v1844_v45 = vadd.f32 %v1764_v28, %v1748_v12  ;;  %v1765_v36 = vmul.f32 %v2377_v32, %v3006_v42  ;;  %2400 = vtanh.f32 %v1369_v29  ;;  %v1373_v38 = vadd.f32 %v1372_v34, %v2983_v5 }
 0x1db   :  { %v2381_v31 = vpop.eup %2380  ;;  %v1862_v48 = vadd.f32 %v1766_v33, %v1750_v17  ;;  %v1767_v49 = vmul.f32 %v2379_v44, %v3006_v42  ;;  %2402 = vtanh.f32 %v1458_v30  ;;  %v1462_v53 = vadd.f32 %v1461_v52, %v2983_v5  ;;  %v1374_v55 = vpop.f32.mrf.mxu0 }
 0x1dc   :  { %v1463_v56 = vpop.f32.mrf.mxu1  ;;  %v2383_v57 = vpop.eup %2382  ;;  %v1853_v58 = vadd.f32 %v1765_v36, %v1749_v22  ;;  %v1780_v59 = vmul.f32 %v2381_v31, %v3022_v54  ;;  %2404 = vtanh.f32 %v1373_v38  ;;  %v1375_v62 = vadd.f32 %v1374_v55, %v2983_v5 }
 0x1dd   :  { %v2385_v63 = vpop.eup %2384  ;;  %v1871_v3 = vadd.f32 %v1767_v49, %v1751_v23  ;;  %v1782_v0 = vmul.f32 %v2383_v57, %v3022_v54  ;;  %2406 = vtanh.f32 %v1462_v53  ;;  %v1464_v1 = vadd.f32 %v1463_v56, %v2983_v5  ;;  %v1378_v2 = vpop.f32.mrf.mxu0 }
 0x1de   :  { %v1467_v6 = vpop.f32.mrf.mxu1  ;;  %v2387_v19 = vpop.eup %2386  ;;  %v1845_v60 = vadd.f32 %v1844_v45, %v1780_v59  ;;  %v1781_v7 = vmul.f32 %v2385_v63, %v3022_v54  ;;  %2408 = vtanh.f32 %v1375_v62  ;;  %v1379_v39 = vadd.f32 %v1378_v2, %v2989_v11 }
 0x1df   :  { %v2389_v46 = vpop.eup %2388  ;;  %v1863_v47 = vadd.f32 %v1862_v48, %v1782_v0  ;;  %v1783_v9 = vmul.f32 %v2387_v19, %v3022_v54  ;;  %2410 = vtanh.f32 %v1464_v1  ;;  %v1468_v4 = vadd.f32 %v1467_v6, %v2989_v11  ;;  %v1380_v12 = vpop.f32.mrf.mxu0 }
 0x1e0   :  { %v1469_v13 = vpop.f32.mrf.mxu1  ;;  %v2391_v14 = vpop.eup %2390  ;;  %v1854_v15 = vadd.f32 %v1853_v58, %v1781_v7  ;;  %v1796_v17 = vmul.f32 %v2389_v46, %v3034_v24  ;;  %2412 = vtanh.f32 %v1379_v39  ;;  %v1381_v35 = vadd.f32 %v1380_v12, %v2989_v11 }
 0x1e1   :  { %v2393_v50 = vpop.eup %2392  ;;  %v1872_v18 = vadd.f32 %v1871_v3, %v1783_v9  ;;  %v1798_v22 = vmul.f32 %v2391_v14, %v3034_v24  ;;  %2414 = vtanh.f32 %v1468_v4  ;;  %v1470_v23 = vadd.f32 %v1469_v13, %v2989_v11  ;;  %v1384_v25 = vpop.f32.mrf.mxu0 }
 0x1e2   :  { %v1473_v26 = vpop.f32.mrf.mxu1  ;;  %v2395_v41 = vpop.eup %2394  ;;  %v1846_v27 = vadd.f32 %v1845_v60, %v1796_v17  ;;  %v1797_v28 = vmul.f32 %v2393_v50, %v3034_v24  ;;  %2416 = vtanh.f32 %v1381_v35  ;;  %v1385_v29 = vadd.f32 %v1384_v25, %v2996_v21 }
 0x1e3   :  { %v1864_v30 = vadd.f32 %v1863_v47, %v1798_v22  ;;  %v1799_v32 = vmul.f32 %v2395_v41, %v3034_v24  ;;  %2418 = vtanh.f32 %v1470_v23  ;;  %v1474_v33 = vadd.f32 %v1473_v26, %v2996_v21  ;;  %v1386_v34 = vpop.f32.mrf.mxu0 }
 0x1e4   :  { %v1475_v52 = vpop.f32.mrf.mxu1  ;;  %v1847_v44 = vrot.slane %v1846_v27, 4  ;;  %v1855_v45 = vadd.f32 %v1854_v15, %v1797_v28  ;;  %2420 = vtanh.f32 %v1385_v29  ;;  %v1387_v36 = vadd.f32 %v1386_v34, %v2996_v21 }
 0x1e5   :  { %v2397_v38 = vpop.eup %2396  ;;  %v1865_v31 = vrot.slane %v1864_v30, 4  ;;  %v3092_v48 = vadd.f32 %v1872_v18, %v1799_v32  ;;  %2422 = vtanh.f32 %v1474_v33  ;;  %v1476_v49 = vadd.f32 %v1475_v52, %v2996_v21  ;;  %v1544_v53 = vpop.f32.mrf.mxu0 }
 0x1e6   :  { %v2399_v55 = vpop.eup %2398  ;;  %v3095_v56 = vadd.f32 %v1847_v44, %v1846_v27  ;;  %v1856_v57 = vrot.slane %v1855_v45, 4  ;;  %2424 = vtanh.f32 %v1387_v36  ;;  %v1633_v58 = vpop.f32.mrf.mxu1  ;;  %v1822_v59 = vrot.slane %v3055_v16, 2 }
 0x1e7   :  { %v2401_v62 = vpop.eup %2400  ;;  %v3098_v63 = vadd.f32 %v1865_v31, %v1864_v30  ;;  %v1874_v3 = vrot.slane %v3092_v48, 4  ;;  %v1752_v0 = vmul.f32 %v2397_v38, %v3004_v37  ;;  %2426 = vtanh.f32 %v1476_v49  ;;  %v1546_v1 = vpop.f32.mrf.mxu0 }
 0x1e8   :  { %v2403_v2 = vpop.eup %2402  ;;  %v3102_v6 = vadd.f32 %v1856_v57, %v1855_v45  ;;  %v1754_v19 = vmul.f32 %v2399_v55, %v3004_v37  ;;  %v1545_v60 = vadd.f32 %v1544_v53, %v2978_v61  ;;  %v1634_v7 = vadd.f32 %v1633_v58, %v2978_v61  ;;  %v1635_v39 = vpop.f32.mrf.mxu1 }
 0x1e9   :  { %v2405_v46 = vpop.eup %2404  ;;  %v1753_v47 = vmul.f32 %v2401_v62, %v3004_v37  ;;  %v1755_v9 = vmul.f32 %v2403_v2, %v3004_v37  ;;  %v1547_v4 = vadd.f32 %v1546_v1, %v2978_v61  ;;  %v1636_v12 = vadd.f32 %v1635_v39, %v2978_v61  ;;  %v1550_v13 = vpop.f32.mrf.mxu0 }
 0x1ea   :  { %v2407_v14 = vpop.eup %2406  ;;  %v1768_v15 = vmul.f32 %v2405_v46, %v3006_v42  ;;  %2428 = vtanh.f32 %v1545_v60  ;;  %v1551_v17 = vadd.f32 %v1550_v13, %v2983_v5  ;;  %v1639_v35 = vpop.f32.mrf.mxu1  ;;  %v1815_v50 = vrot.slane %v3068_v40, 1 }
 0x1eb   :  { %v2409_v18 = vpop.eup %2408  ;;  %v1770_v22 = vmul.f32 %v2407_v14, %v3006_v42  ;;  %2430 = vtanh.f32 %v1634_v7  ;;  %v1640_v23 = vadd.f32 %v1639_v35, %v2983_v5  ;;  %v1552_v25 = vpop.f32.mrf.mxu0  ;;  %v3117_v26 = vadd.f32 %v1822_v59, %v3055_v16 }
 0x1ec   :  { %v2411_v61 = vpop.eup %2410  ;;  %v1880_v41 = vadd.f32 %v1768_v15, %v1752_v0  ;;  %v1769_v27 = vmul.f32 %v2409_v18, %v3006_v42  ;;  %2432 = vtanh.f32 %v1547_v4  ;;  %v1553_v28 = vadd.f32 %v1552_v25, %v2983_v5  ;;  %v1641_v29 = vpop.f32.mrf.mxu1 }
 0x1ed   :  { %v2413_v30 = vpop.eup %2412  ;;  %v1898_v32 = vadd.f32 %v1770_v22, %v1754_v19  ;;  %v1771_v33 = vmul.f32 %v2411_v61, %v3006_v42  ;;  %2434 = vtanh.f32 %v1636_v12  ;;  %v1642_v34 = vadd.f32 %v1641_v29, %v2983_v5  ;;  %v1556_v52 = vpop.f32.mrf.mxu0 }
 0x1ee   :  { %v2415_v44 = vpop.eup %2414  ;;  %v1889_v45 = vadd.f32 %v1769_v27, %v1753_v47  ;;  %v1784_v16 = vmul.f32 %v2413_v30, %v3022_v54  ;;  %2436 = vtanh.f32 %v1551_v17  ;;  %v1557_v36 = vadd.f32 %v1556_v52, %v2989_v11  ;;  %v1645_v38 = vpop.f32.mrf.mxu1 }
 0x1ef   :  { %v2417_v31 = vpop.eup %2416  ;;  %v1907_v49 = vadd.f32 %v1771_v33, %v1755_v9  ;;  %v1786_v53 = vmul.f32 %v2415_v44, %v3022_v54  ;;  %2438 = vtanh.f32 %v1640_v23  ;;  %v1646_v55 = vadd.f32 %v1645_v38, %v2989_v11  ;;  %v1558_v57 = vpop.f32.mrf.mxu0 }
 0x1f0   :  { %v2419_v58 = vpop.eup %2418  ;;  %v1881_v59 = vadd.f32 %v1880_v41, %v1784_v16  ;;  %v1785_v5 = vmul.f32 %v2417_v31, %v3022_v54  ;;  %2440 = vtanh.f32 %v1553_v28  ;;  %v1559_v62 = vadd.f32 %v1558_v57, %v2989_v11  ;;  %v1647_v0 = vpop.f32.mrf.mxu1 }
 0x1f1   :  { %v2421_v1 = vpop.eup %2420  ;;  %v1899_v2 = vadd.f32 %v1898_v32, %v1786_v53  ;;  %v1787_v19 = vmul.f32 %v2419_v58, %v3022_v54  ;;  %2442 = vtanh.f32 %v1642_v34  ;;  %v1648_v60 = vadd.f32 %v1647_v0, %v2989_v11  ;;  %v1562_v7 = vpop.f32.mrf.mxu0 }
 0x1f2   :  { %v2423_v39 = vpop.eup %2422  ;;  %v1890_v46 = vadd.f32 %v1889_v45, %v1785_v5  ;;  %v1800_v47 = vmul.f32 %v2421_v1, %v3034_v24  ;;  %2444 = vtanh.f32 %v1557_v36  ;;  %v1563_v9 = vadd.f32 %v1562_v7, %v2996_v21  ;;  %v1651_v4 = vpop.f32.mrf.mxu1 }
 0x1f3   :  { %v2425_v12 = vpop.eup %2424  ;;  %v1908_v13 = vadd.f32 %v1907_v49, %v1787_v19  ;;  %v1802_v14 = vmul.f32 %v2423_v39, %v3034_v24  ;;  %2446 = vtanh.f32 %v1646_v55  ;;  %v1652_v15 = vadd.f32 %v1651_v4, %v2996_v21  ;;  %v1564_v17 = vpop.f32.mrf.mxu0 }
 0x1f4   :  { %v2427_v35 = vpop.eup %2426  ;;  %v1882_v18 = vadd.f32 %v1881_v59, %v1800_v47  ;;  %v1801_v11 = vmul.f32 %v2425_v12, %v3034_v24  ;;  %2448 = vtanh.f32 %v1559_v62  ;;  %v1565_v22 = vadd.f32 %v1564_v17, %v2996_v21  ;;  %v1653_v23 = vpop.f32.mrf.mxu1 }
 0x1f5   :  { %v1900_v25 = vadd.f32 %v1899_v2, %v1802_v14  ;;  %v1803_v61 = vmul.f32 %v2427_v35, %v3034_v24  ;;  %2450 = vtanh.f32 %v1648_v60  ;;  %v1654_v41 = vadd.f32 %v1653_v23, %v2996_v21 }
 0x1f6   :  { %v3142_v27 = vadd.f32 %v1874_v3, %v3092_v48  ;;  %v1883_v28 = vrot.slane %v1882_v18, 4  ;;  %v1891_v29 = vadd.f32 %v1890_v46, %v1801_v11  ;;  %2452 = vtanh.f32 %v1563_v9 }
 0x1f7   :  { %v2429_v30 = vpop.eup %2428  ;;  %v1901_v32 = vrot.slane %v1900_v25, 4  ;;  %v1909_v33 = vadd.f32 %v1908_v13, %v1803_v61  ;;  %2454 = vtanh.f32 %v1652_v15  ;;  %v1824_v34 = vrot.slane %v3117_v26, 1 }
 0x1f8   :  { %v2431_v52 = vpop.eup %2430  ;;  %v3145_v44 = vadd.f32 %v1883_v28, %v1882_v18  ;;  %v1892_v45 = vrot.slane %v1891_v29, 4  ;;  %2456 = vtanh.f32 %v1565_v22  ;;  %v3150_v21 = vadd.f32 %v1815_v50, %v3068_v40 }
 0x1f9   :  { %v2433_v48 = vpop.eup %2432  ;;  %v3152_v3 = vadd.f32 %v1901_v32, %v1900_v25  ;;  %v1910_v16 = vrot.slane %v1909_v33, 4  ;;  %v1756_v36 = vmul.f32 %v2429_v30, %v3004_v37  ;;  %2458 = vtanh.f32 %v1654_v41 }
 0x1fa   :  { %v2435_v38 = vpop.eup %2434  ;;  %v1893_v31 = vadd.f32 %v1892_v45, %v1891_v29  ;;  %v1758_v49 = vmul.f32 %v2431_v52, %v3004_v37  ;;  %v1757_v53 = vmul.f32 %v2433_v48, %v3004_v37  ;;  %v1832_v55 = vadd.f32 %v1831_v43, %v3052_v10 }
 0x1fb   :  { %v2437_v57 = vpop.eup %2436  ;;  %v3160_v40 = vadd.f32 %v1910_v16, %v1909_v33  ;;  %v3163_v50 = vadd.f32 %v1824_v34, %v3117_v26  ;;  %v1840_v58 = vrot.slane %v3060_v20, 2  ;;  %v1849_v59 = vrot.slane %v3095_v56, 2 }
 0x1fc   :  { %v2439_v5 = vpop.eup %2438  ;;  %v1772_v62 = vmul.f32 %v2437_v57, %v3006_v42  ;;  %v1833_v0 = vrot.slane %v1832_v55, 1  ;;  %v1858_v1 = vrot.slane %v3102_v6, 2  ;;  %v1867_v2 = vrot.slane %v3098_v63, 2 }
 0x1fd   :  { %v2441_v19 = vpop.eup %2440  ;;  %v1759_v10 = vmul.f32 %v2435_v38, %v3004_v37  ;;  %v1774_v43 = vmul.f32 %v2439_v5, %v3006_v42  ;;  %v1841_v26 = vadd.f32 %v1840_v58, %v3060_v20  ;;  %v1850_v60 = vadd.f32 %v1849_v59, %v3095_v56 }
 0x1fe   :  { %v2443_v7 = vpop.eup %2442  ;;  %v1916_v39 = vadd.f32 %v1772_v62, %v1756_v36  ;;  %v1773_v46 = vmul.f32 %v2441_v19, %v3006_v42  ;;  %v1859_v47 = vadd.f32 %v1858_v1, %v3102_v6  ;;  %v1876_v9 = vrot.slane %v3142_v27, 2 }
 0x1ff   :  { %v2445_v4 = vpop.eup %2444  ;;  %v1775_v12 = vmul.f32 %v2443_v7, %v3006_v42  ;;  %v3178_v13 = vadd.f32 %v1833_v0, %v1832_v55  ;;  %v1842_v37 = vrot.slane %v1841_v26, 1  ;;  %v1851_v14 = vrot.slane %v1850_v60, 1 }
 0x200   :  { %v2447_v15 = vpop.eup %2446  ;;  %v1934_v17 = vadd.f32 %v1774_v43, %v1758_v49  ;;  %v1788_v20 = vmul.f32 %v2445_v4, %v3022_v54  ;;  %v1860_v56 = vrot.slane %v1859_v47, 1  ;;  %v1868_v35 = vadd.f32 %v1867_v2, %v3098_v63 }
 0x201   :  { %v2449_v18 = vpop.eup %2448  ;;  %v1925_v11 = vadd.f32 %v1773_v46, %v1757_v53  ;;  %v1943_v22 = vadd.f32 %v1775_v12, %v1759_v10  ;;  %v1790_v6 = vmul.f32 %v2447_v15, %v3022_v54  ;;  %v1843_v23 = vadd.f32 %v1842_v37, %v1841_v26 }
 0x202   :  { %v2451_v25 = vpop.eup %2450  ;;  %v1917_v61 = vadd.f32 %v1916_v39, %v1788_v20  ;;  %v1789_v42 = vmul.f32 %v2449_v18, %v3022_v54  ;;  %v1852_v41 = vadd.f32 %v1851_v14, %v1850_v60  ;;  %v1869_v28 = vrot.slane %v1868_v35, 1 }
 0x203   :  { %v2453_v29 = vpop.eup %2452  ;;  %v1791_v30 = vmul.f32 %v2451_v25, %v3022_v54  ;;  %v1861_v32 = vadd.f32 %v1860_v56, %v1859_v47  ;;  %v1877_v33 = vadd.f32 %v1876_v9, %v3142_v27  ;;  %v1885_v63 = vrot.slane %v3145_v44, 2 }
 0x204   :  { %v2455_v34 = vpop.eup %2454  ;;  %v1935_v52 = vadd.f32 %v1934_v17, %v1790_v6  ;;  %v1926_v45 = vadd.f32 %v1925_v11, %v1789_v42  ;;  %v1804_v48 = vmul.f32 %v2453_v29, %v3034_v24  ;;  %v1894_v16 = vrot.slane %v1893_v31, 2 }
 0x205   :  { %v2457_v36 = vpop.eup %2456  ;;  %v1806_v38 = vmul.f32 %v2455_v34, %v3034_v24  ;;  %v1870_v49 = vadd.f32 %v1869_v28, %v1868_v35  ;;  %v1878_v53 = vrot.slane %v1877_v33, 1  ;;  %v1886_v55 = vadd.f32 %v1885_v63, %v3145_v44 }
 0x206   :  { %v2459_v57 = vpop.eup %2458  ;;  %v1918_v54 = vadd.f32 %v1917_v61, %v1804_v48  ;;  %v1805_v58 = vmul.f32 %v2457_v36, %v3034_v24  ;;  %v1895_v27 = vadd.f32 %v1894_v16, %v1893_v31  ;;  %v1903_v59 = vrot.slane %v3152_v3, 2 }
 0x207   :  { %v1944_v5 = vadd.f32 %v1943_v22, %v1791_v30  ;;  %v1936_v62 = vadd.f32 %v1935_v52, %v1806_v38  ;;  %v1807_v0 = vmul.f32 %v2459_v57, %v3034_v24  ;;  %v1887_v1 = vrot.slane %v1886_v55, 1 }
 0x208   :  { %v1919_v2 = vrot.slane %v1918_v54, 4  ;;  %v1927_v19 = vadd.f32 %v1926_v45, %v1805_v58  ;;  %v1896_v10 = vrot.slane %v1895_v27, 1  ;;  %v1904_v43 = vadd.f32 %v1903_v59, %v3152_v3 }
 0x209   :  { %v1937_v26 = vrot.slane %v1936_v62, 4  ;;  %v1945_v60 = vadd.f32 %v1944_v5, %v1807_v0  ;;  %v1879_v44 = vadd.f32 %v1878_v53, %v1877_v33  ;;  %v1912_v7 = vrot.slane %v3160_v40, 2 }
 0x20a   :  { %v1920_v39 = vadd.f32 %v1919_v2, %v1918_v54  ;;  %v1928_v46 = vrot.slane %v1927_v19, 4  ;;  %v1888_v31 = vadd.f32 %v1887_v1, %v1886_v55  ;;  %v1905_v47 = vrot.slane %v1904_v43, 1 }
 0x20b   :  { %v1938_v9 = vadd.f32 %v1937_v26, %v1936_v62  ;;  %v1946_v4 = vrot.slane %v1945_v60, 4  ;;  %v1897_v12 = vadd.f32 %v1896_v10, %v1895_v27  ;;  %v1913_v24 = vadd.f32 %v1912_v7, %v3160_v40 }
 0x20c   :  { %v1929_v37 = vadd.f32 %v1928_v46, %v1927_v19  ;;  %v1906_v14 = vadd.f32 %v1905_v47, %v1904_v43  ;;  %v1921_v15 = vrot.slane %v1920_v39, 2  ;;  %v1962_v3 = vadd.f32 %v3050_v8, %v3150_v21 }
 0x20d   :  { %v1947_v17 = vadd.f32 %v1946_v4, %v1945_v60  ;;  %v1914_v20 = vrot.slane %v1913_v24, 1  ;;  %v1939_v56 = vrot.slane %v1938_v9, 2  ;;  %v1963_v35 = vadd.f32 %v3050_v8, %v3163_v50 }
 0x20e   :  { %v1922_v18 = vadd.f32 %v1921_v15, %v1920_v39  ;;  %v1930_v11 = vrot.slane %v1929_v37, 2  ;;  %v1964_v22 = vadd.f32 %v3050_v8, %v3178_v13  ;;  %v1965_v6 = vadd.f32 %v3050_v8, %v1843_v23 }
 0x20f   :  { %v1915_v40 = vadd.f32 %v1914_v20, %v1913_v24  ;;  %v1940_v25 = vadd.f32 %v1939_v56, %v1938_v9  ;;  %v1948_v61 = vrot.slane %v1947_v17, 2  ;;  %v1966_v42 = vadd.f32 %v3050_v8, %v1852_v41 }
 0x210   :  { %v1923_v28 = vrot.slane %v1922_v18, 1  ;;  %v1931_v21 = vadd.f32 %v1930_v11, %v1929_v37  ;;  %v1967_v29 = vadd.f32 %v3050_v8, %v1861_v32  ;;  %v1969_v30 = vadd.f32 %v3050_v8, %v1879_v44 }
 0x211   :  { %v1941_v33 = vrot.slane %v1940_v25, 1  ;;  %v1949_v50 = vadd.f32 %v1948_v61, %v1947_v17  ;;  %v1968_v63 = vadd.f32 %v3050_v8, %v1870_v49  ;;  %v1970_v34 = vadd.f32 %v3050_v8, %v1888_v31 }
 0x212   :  { %v1924_v13 = vadd.f32 %v1923_v28, %v1922_v18  ;;  %v1932_v52 = vrot.slane %v1931_v21, 1  ;;  %v1971_v23 = vadd.f32 %v3050_v8, %v1897_v12  ;;  %v1973_v45 = vadd.f32 %v3050_v8, %v1915_v40 }
 0x213   :  { %v1942_v48 = vadd.f32 %v1941_v33, %v1940_v25  ;;  %v1950_v41 = vrot.slane %v1949_v50, 1  ;;  %v1994_v16 = vcombine.low %v1962_v3, %v1963_v35  ;;  %v1995_v36 = vcombine.low %v1964_v22, %v1965_v6 }
 0x214   :  { %v1933_v38 = vadd.f32 %v1932_v52, %v1931_v21  ;;  %v1972_v32 = vadd.f32 %v3050_v8, %v1906_v14  ;;  %v1996_v53 = vcombine.low %v1966_v42, %v1967_v29  ;;  %v1997_v55 = vcombine.low %v1968_v63, %v1969_v30 }
 0x215   :  { %v1951_v57 = vadd.f32 %v1950_v41, %v1949_v50  ;;  %v1974_v49 = vadd.f32 %v3050_v8, %v1924_v13  ;;  %v2004_v54 = vrot.slane %v1994_v16, %v3012_v51  ;;  %v2011_v58 = vrot.slane %v1995_v36, %v3012_v51 }
 0x216   :  { %v1975_v27 = vadd.f32 %v3050_v8, %v1933_v38  ;;  %v2018_v59 = vrot.slane %v1996_v53, %v3012_v51  ;;  %v2025_v5 = vrot.slane %v1997_v55, %v3012_v51  ;;  %v2043_v62 = vcombine.low %v1970_v34, %v1971_v23 }
 0x217   :  { %v1976_v0 = vadd.f32 %v3050_v8, %v1942_v48  ;;  %v1977_v1 = vadd.f32 %v3050_v8, %v1951_v57  ;;  %v2026_v2 = vcombine.low %v2004_v54, %v2011_v58  ;;  %v2044_v19 = vcombine.low %v1972_v32, %v1973_v45 }
 0x218   :  { %v2027_v10 = vcombine.low %v2018_v59, %v2025_v5  ;;  %v2045_v43 = vcombine.low %v1974_v49, %v1975_v27  ;;  %v2053_v26 = vrot.slane %v2043_v62, %v3012_v51 }
 0x219   :  { %v2046_v60 = vcombine.low %v1976_v0, %v1977_v1  ;;  %v2060_v44 = vrot.slane %v2044_v19, %v3012_v51  ;;  %v2034_v7 = vrot.slane %v2026_v2, %v3012_v51 }
 0x21a   :  { %v2041_v39 = vrot.slane %v2027_v10, %v3012_v51  ;;  %v2067_v46 = vrot.slane %v2045_v43, %v3012_v51 }
 0x21b   :  { %v2074_v31 = vrot.slane %v2046_v60, %v3012_v51  ;;  %v2075_v47 = vcombine.low %v2053_v26, %v2060_v44 }
 0x21c   :  { %v2042_v9 = vcombine.low %v2034_v7, %v2041_v39 }
 0x21d   :  { %v2076_v8 = vcombine.low %v2067_v46, %v2074_v31  ;;  %v2083_v4 = vrot.slane %v2075_v47, %v3012_v51 }
 0x21e   :  { %2094 = vst [vmem:[#allocation3] sm:$0xff] %v2042_v9 }
 0x21f   :  { %v2090_v12 = vrot.slane %v2076_v8, %v3012_v51 }
 0x221   :  { %v2091_v24 = vcombine.low %v2083_v4, %v2090_v12 }
 0x223   :  { %2095 = vst [vmem:[#allocation3 + $0x8] sm:$0xff] %v2091_v24 }
 0x224   :  { %2471 = shalt.err (!%p2468_p4)
}
 0x225   :  { %2105 = dma.vmem_to_hbm [thread:$0]  %s2103_s29, 256, %s3237_s7, [#allocation4]  }
 0x226   :  { %2480 = dma.done.wait [#allocation4], 256  }
 0x227   :  { %2481 = vsyncadd [#allocation4], 4294967040 }
 0x228   :  { %2109 = vsyncpa [#allocation4], 1 }

</bundles_post_ra>
